<compile_context>
chip_gen: v6e
topology: v6e:2x2x1
jax: 0.10.0
libtpu: 0.0.40
codegen_flags: <defaults>
</compile_context>

<pallas_src>
import functools

import jax
import jax.numpy as jnp
from jax.experimental import pallas as pl
from jax.experimental.pallas import tpu as pltpu


# ----------------------------------------------------------------------------
# In-kernel helpers
# ----------------------------------------------------------------------------
def _dx_cat_with_halo(x):
    """x: (H, W, C) -> (H+2, W, 3*C).

    out[r, f, dx*C + c] == zero-padded x at (r-1, f-1+dx, c): the three
    frequency(dx)-shifted copies of the 'same'-padded input concatenated along
    the channel axis, plus a one-row zero halo top/bottom for the dy taps."""
    H, W, C = x.shape
    zcol = jnp.zeros((H, 1, C), x.dtype)
    xc = jnp.concatenate(
        [jnp.concatenate([zcol, x[:, :W - 1, :]], axis=1),   # dx = 0 (f - 1)
         x,                                                  # dx = 1 (f)
         jnp.concatenate([x[:, 1:, :], zcol], axis=1)],      # dx = 2 (f + 1)
        axis=-1)                                             # (H, W, 3C)
    zrow = jnp.zeros((1, W, 3 * C), x.dtype)
    return jnp.concatenate([zrow, xc, zrow], axis=0)         # (H+2, W, 3C)


def _conv3x3_bias_relu(x_cat, w_ref, b, H, W):
    """x_cat: (H+2, W, K) bf16 with dx folded into K; w_ref: (3, K, Cout) bf16;
    b: (1, Cout) f32.  Returns (H, W, Cout) f32 after bias + ReLU.
    Three MXU matmuls (one per dy); per-dy operand is a leading-dim slice."""
    K = x_cat.shape[-1]
    Cout = w_ref.shape[-1]
    N = H * W
    acc = jnp.zeros((N, Cout), jnp.float32)
    for dy in range(3):
        a = x_cat[dy:dy + H].reshape(N, K)
        acc = acc + jnp.dot(a, w_ref[dy], preferred_element_type=jnp.float32)
    return jnp.maximum(acc + b, 0.0).reshape(H, W, Cout)


def _maxpool2x2_ceil(a):
    """ceil-mode 2x2/stride-2 max pool of (H, W, C); exact because a >= 0
    post-ReLU so zero-padding odd dims to even is equivalent to ceil_mode."""
    H, W, C = a.shape
    Hp, Wp = H, W
    if H % 2:
        a = jnp.concatenate([a, jnp.zeros((1, W, C), a.dtype)], axis=0)
        Hp += 1
    if W % 2:
        a = jnp.concatenate([a, jnp.zeros((Hp, 1, C), a.dtype)], axis=1)
        Wp += 1
    a = a.reshape(Hp // 2, 2, Wp, C)           # split time (leading dim: cheap)
    a = jnp.maximum(a[:, 0], a[:, 1])
    a = a.reshape(Hp // 2, Wp // 2, 2, C)      # split frequency (sublane)
    return jnp.maximum(a[:, :, 0, :], a[:, :, 1, :])


# ----------------------------------------------------------------------------
# Fused VGG block kernel: conv_a + ReLU + conv_b + ReLU + 2x2 ceil max-pool.
# The conv_a output (the previously HBM-round-tripped activation) stays in
# VMEM for the whole block.
# ----------------------------------------------------------------------------
def _vgg_block_kernel(x_ref, wa_ref, ba_ref, wb_ref, bb_ref, o_ref, *,
                      H, W, input_is_dx_cat):
    if input_is_dx_cat:
        x_cat = x_ref[0]                              # (H+2, W, K) bf16 (wrapper-built)
    else:
        x_cat = _dx_cat_with_halo(x_ref[0])           # tight (H, W, Cin) bf16
    a = _conv3x3_bias_relu(x_cat, wa_ref, ba_ref[...], H, W)     # (H, W, Ca) f32
    a_cat = _dx_cat_with_halo(a.astype(jnp.bfloat16))            # VMEM resident
    a = _conv3x3_bias_relu(a_cat, wb_ref, bb_ref[...], H, W)     # (H, W, Cb) f32
    pooled = _maxpool2x2_ceil(a)
    o_ref[...] = pooled.astype(o_ref.dtype).reshape(o_ref.shape)


def _vgg_block(x, wa, ba, wb, bb, *, input_is_dx_cat, out_dtype):
    """x: (B, H+2, W, K) if input_is_dx_cat else tight (B, H, W, Cin)."""
    B, d1, W, _ = x.shape
    H = d1 - 2 if input_is_dx_cat else d1
    Ho, Wo = (H + 1) // 2, (W + 1) // 2
    Cb = wb.shape[-1]
    kernel = functools.partial(_vgg_block_kernel, H=H, W=W,
                               input_is_dx_cat=input_is_dx_cat)
    return pl.pallas_call(
        kernel,
        grid=(B,),
        in_specs=[
            pl.BlockSpec((1,) + x.shape[1:], lambda i: (i, 0, 0, 0)),
            pl.BlockSpec(wa.shape, lambda i: (0, 0, 0)),
            pl.BlockSpec(ba.shape, lambda i: (0, 0)),
            pl.BlockSpec(wb.shape, lambda i: (0, 0, 0)),
            pl.BlockSpec(bb.shape, lambda i: (0, 0)),
        ],
        out_specs=pl.BlockSpec((1, Ho, Wo, Cb), lambda i: (i, 0, 0, 0)),
        out_shape=jax.ShapeDtypeStruct((B, Ho, Wo, Cb), out_dtype),
        compiler_params=pltpu.CompilerParams(
            dimension_semantics=("parallel",),
            vmem_limit_bytes=64 * 1024 * 1024),
    )(x, wa, ba, wb, bb)


# ----------------------------------------------------------------------------
# OnnxVGG2l.forward
# ----------------------------------------------------------------------------
def onnx_vgg2l_forward(xs_pad, ilens, params, *, in_channel=1):
    B, T, D = xs_pad.shape
    F = D // in_channel

    # (B, T, C*F) -> (B, T, C, F) -> NHWC (B, T, F, C); build the dx-folded,
    # 'same'-padded conv1_1 operand (tiny, Cin = in_channel) so its contraction
    # also runs on the MXU.  Zero-pad K up to the weight's aligned K.
    x = jnp.transpose(xs_pad.reshape(B, T, in_channel, F), (0, 1, 3, 2))
    xp = jnp.pad(x, ((0, 0), (1, 1), (1, 1), (0, 0))).astype(jnp.bfloat16)
    x_cat = jnp.concatenate(
        [xp[:, :, 0:F, :], xp[:, :, 1:F + 1, :], xp[:, :, 2:F + 2, :]], axis=-1)
    k1 = params["w1_1"].shape[1]
    if x_cat.shape[-1] < k1:
        x_cat = jnp.pad(
            x_cat, ((0, 0), (0, 0), (0, 0), (0, k1 - x_cat.shape[-1])))

    h1 = _vgg_block(x_cat, params["w1_1"], params["b1_1"],
                    params["w1_2"], params["b1_2"],
                    input_is_dx_cat=True, out_dtype=jnp.bfloat16)
    h2 = _vgg_block(h1, params["w2_1"], params["b2_1"],
                    params["w2_2"], params["b2_2"],
                    input_is_dx_cat=False, out_dtype=jnp.float32)

    # NHWC (B, T', F', C) -> (B, T', C, F') -> (B, T', C*F')  (PyTorch order)
    B2, T2, F2, C2 = h2.shape
    xs_out = jnp.transpose(h2, (0, 1, 3, 2)).reshape(B2, T2, C2 * F2)

    ilens = jnp.asarray(ilens)
    ilens_out = jnp.ceil(ilens.astype(jnp.float32) / 4.0).astype(jnp.int32)
    return xs_out, ilens_out, None


# ----------------------------------------------------------------------------
# Synthetic parameters (PyTorch Conv2d-style shapes/init), TPU layout.
# ----------------------------------------------------------------------------
def _conv_params(key, cin, cout, *, k_pad_to=1):
    kw, kb = jax.random.split(key)
    bound = 1.0 / (cin * 9) ** 0.5
    w = jax.random.uniform(kw, (cout, cin, 3, 3), jnp.float32, -bound, bound)
    b = jax.random.uniform(kb, (cout,), jnp.float32, -bound, bound)
    # (Cout, Cin, 3, 3) -> (dy, dx, Cin, Cout) -> (3, 3*Cin, Cout): the dx taps
    # are folded into the contraction dim; bf16 for the MXU.
    w3 = jnp.transpose(w, (2, 3, 1, 0)).reshape(3, 3 * cin, cout)
    k = max(3 * cin, k_pad_to)
    if k > 3 * cin:
        w3 = jnp.pad(w3, ((0, 0), (0, k - 3 * cin), (0, 0)))
    return w3.astype(jnp.bfloat16), b.reshape(1, cout), w, b


def init_params(key, in_channel=1, c1=64, c2=128):
    ks = jax.random.split(key, 4)
    p, raw = {}, {}
    p["w1_1"], p["b1_1"], raw["w1_1"], raw["b1_1"] = _conv_params(
        ks[0], in_channel, c1, k_pad_to=8)
    p["w1_2"], p["b1_2"], raw["w1_2"], raw["b1_2"] = _conv_params(ks[1], c1, c1)
    p["w2_1"], p["b2_1"], raw["w2_1"], raw["b2_1"] = _conv_params(ks[2], c1, c2)
    p["w2_2"], p["b2_2"], raw["w2_2"], raw["b2_2"] = _conv_params(ks[3], c2, c2)
    return p, raw


# ----------------------------------------------------------------------------
# Pure-JAX f32 reference (for a loose cross-check; kernel uses bf16 operands).
# ----------------------------------------------------------------------------
def _reference_forward(xs_pad, raw, in_channel):
    B, T, D = xs_pad.shape
    F = D // in_channel
    x = jnp.transpose(xs_pad.reshape(B, T, in_channel, F), (0, 2, 1, 3))  # NCHW

    def conv(x, w, b):
        y = jax.lax.conv_general_dilated(
            x, w, (1, 1), ((1, 1), (1, 1)),
            dimension_numbers=("NCHW", "OIHW", "NCHW"),
            precision=jax.lax.Precision.HIGHEST)
        return jax.nn.relu(y + b[None, :, None, None])

    def pool(x):
        B_, C_, H_, W_ = x.shape
        x = jnp.pad(x, ((0, 0), (0, 0), (0, H_ % 2), (0, W_ % 2)))
        x = x.reshape(B_, C_, (H_ + 1) // 2, 2, (W_ + 1) // 2, 2)
        return x.max(axis=(3, 5))

    x = pool(conv(conv(x, raw["w1_1"], raw["b1_1"]), raw["w1_2"], raw["b1_2"]))
    x = pool(conv(conv(x, raw["w2_1"], raw["b2_1"]), raw["w2_2"], raw["b2_2"]))
    x = jnp.transpose(x, (0, 2, 1, 3))
    return x.reshape(x.shape[0], x.shape[1], -1)


if __name__ == "__main__":
    B, T, IN_CH, F = 2, 8, 1, 16          # xs_pad: (2, 8, 16)
    C2 = 128

    key = jax.random.PRNGKey(0)
    k_x, k_p = jax.random.split(key)
    xs_pad = jax.random.normal(k_x, (B, T, IN_CH * F), dtype=jnp.float32)
    ilens = jnp.array([T, T - 2], dtype=jnp.int32)
    params, raw = init_params(k_p, in_channel=IN_CH)

    fwd = jax.jit(functools.partial(onnx_vgg2l_forward, in_channel=IN_CH))
    xs_out, ilens_out, states = fwd(xs_pad, ilens, params)
    jax.block_until_ready((xs_out, ilens_out))

    T2 = (((T + 1) // 2) + 1) // 2
    F2 = (((F + 1) // 2) + 1) // 2
    assert xs_out.shape == (B, T2, C2 * F2), xs_out.shape
    assert ilens_out.shape == (B,)
    assert ilens_out.tolist() == [2, 2], ilens_out
    assert states is None
    assert bool(jnp.all(jnp.isfinite(xs_out)))

    # Loose cross-check against the f32 reference (bf16 MXU operands).
    ref = _reference_forward(xs_pad, raw, IN_CH)
    max_err = float(jnp.max(jnp.abs(xs_out - ref)))
    assert max_err < 1e-1, max_err

    print("KERNEL_OK")
</pallas_src>

<mosaic_0001>
module attributes {stable_mosaic.version = 11 : i64} {
  func.func @_vgg_block_kernel(%arg0: i32, %arg1: memref<1x10x16x8xbf16, #tpu.memory_space<vmem>>, %arg2: memref<3x8x64xbf16, #tpu.memory_space<vmem>>, %arg3: memref<1x64xf32, #tpu.memory_space<vmem>>, %arg4: memref<3x192x64xbf16, #tpu.memory_space<vmem>>, %arg5: memref<1x64xf32, #tpu.memory_space<vmem>>, %arg6: memref<1x4x8x64xbf16, #tpu.memory_space<vmem>>) attributes {dimension_semantics = [#tpu.dimension_semantics<parallel>], iteration_bounds = array<i64: 2>, scalar_prefetch = 0 : i64, scratch_operands = 0 : i64, tpu.core_type = #tpu.core_type<tc>, window_params = [{transform_indices = @transform_0, window_bounds = array<i64: 1, 10, 16, 8>}, {pipeline_mode = #tpu.pipeline_mode<synchronous>, transform_indices = @transform_1, window_bounds = array<i64: 3, 8, 64>}, {pipeline_mode = #tpu.pipeline_mode<synchronous>, transform_indices = @transform_2, window_bounds = array<i64: 1, 64>}, {pipeline_mode = #tpu.pipeline_mode<synchronous>, transform_indices = @transform_3, window_bounds = array<i64: 3, 192, 64>}, {pipeline_mode = #tpu.pipeline_mode<synchronous>, transform_indices = @transform_4, window_bounds = array<i64: 1, 64>}, {transform_indices = @transform_5, window_bounds = array<i64: 1, 4, 8, 64>}]} {
    %c0 = arith.constant 0 : index
    %c0_0 = arith.constant 0 : index
    %c0_1 = arith.constant 0 : index
    %c0_2 = arith.constant 0 : index
    %0 = vector.load %arg1[%c0, %c0_0, %c0_1, %c0_2] : memref<1x10x16x8xbf16, #tpu.memory_space<vmem>>, vector<1x10x16x8xbf16>
    %1 = vector.shape_cast %0 : vector<1x10x16x8xbf16> to vector<10x16x8xbf16>
    %c0_3 = arith.constant 0 : index
    %c0_4 = arith.constant 0 : index
    %2 = vector.load %arg3[%c0_3, %c0_4] : memref<1x64xf32, #tpu.memory_space<vmem>>, vector<1x64xf32>
    %cst = arith.constant 0.000000e+00 : f32
    %3 = vector.broadcast %cst : f32 to vector<128x64xf32>
    %4 = vector.extract_strided_slice %1 {offsets = [0, 0, 0], sizes = [8, 16, 8], strides = [1, 1, 1]} : vector<10x16x8xbf16> to vector<8x16x8xbf16>
    %5 = vector.shape_cast %4 : vector<8x16x8xbf16> to vector<128x8xbf16>
    %c0_5 = arith.constant 0 : index
    %c0_6 = arith.constant 0 : index
    %c0_7 = arith.constant 0 : index
    %6 = vector.load %arg2[%c0_5, %c0_6, %c0_7] : memref<3x8x64xbf16, #tpu.memory_space<vmem>>, vector<1x8x64xbf16>
    %7 = vector.shape_cast %6 : vector<1x8x64xbf16> to vector<8x64xbf16>
    %cst_8 = arith.constant dense<0.000000e+00> : vector<128x64xf32>
    %8 = tpu.matmul %5, %7, %cst_8 {dimension_numbers = #tpu.dot_dimension_numbers<[1], [0], [0], [1], [0, 0, 1, 1], [], []>} : vector<128x8xbf16>, vector<8x64xbf16>, vector<128x64xf32> -> vector<128x64xf32>
    %9 = arith.addf %3, %8 : vector<128x64xf32>
    %10 = vector.extract_strided_slice %1 {offsets = [1, 0, 0], sizes = [8, 16, 8], strides = [1, 1, 1]} : vector<10x16x8xbf16> to vector<8x16x8xbf16>
    %11 = vector.shape_cast %10 : vector<8x16x8xbf16> to vector<128x8xbf16>
    %c1 = arith.constant 1 : index
    %c0_9 = arith.constant 0 : index
    %c0_10 = arith.constant 0 : index
    %12 = vector.load %arg2[%c1, %c0_9, %c0_10] : memref<3x8x64xbf16, #tpu.memory_space<vmem>>, vector<1x8x64xbf16>
    %13 = vector.shape_cast %12 : vector<1x8x64xbf16> to vector<8x64xbf16>
    %cst_11 = arith.constant dense<0.000000e+00> : vector<128x64xf32>
    %14 = tpu.matmul %11, %13, %cst_11 {dimension_numbers = #tpu.dot_dimension_numbers<[1], [0], [0], [1], [0, 0, 1, 1], [], []>} : vector<128x8xbf16>, vector<8x64xbf16>, vector<128x64xf32> -> vector<128x64xf32>
    %15 = arith.addf %9, %14 : vector<128x64xf32>
    %16 = vector.extract_strided_slice %1 {offsets = [2, 0, 0], sizes = [8, 16, 8], strides = [1, 1, 1]} : vector<10x16x8xbf16> to vector<8x16x8xbf16>
    %17 = vector.shape_cast %16 : vector<8x16x8xbf16> to vector<128x8xbf16>
    %c2 = arith.constant 2 : index
    %c0_12 = arith.constant 0 : index
    %c0_13 = arith.constant 0 : index
    %18 = vector.load %arg2[%c2, %c0_12, %c0_13] : memref<3x8x64xbf16, #tpu.memory_space<vmem>>, vector<1x8x64xbf16>
    %19 = vector.shape_cast %18 : vector<1x8x64xbf16> to vector<8x64xbf16>
    %cst_14 = arith.constant dense<0.000000e+00> : vector<128x64xf32>
    %20 = tpu.matmul %17, %19, %cst_14 {dimension_numbers = #tpu.dot_dimension_numbers<[1], [0], [0], [1], [0, 0, 1, 1], [], []>} : vector<128x8xbf16>, vector<8x64xbf16>, vector<128x64xf32> -> vector<128x64xf32>
    %21 = arith.addf %15, %20 : vector<128x64xf32>
    %22 = vector.broadcast %2 : vector<1x64xf32> to vector<128x64xf32>
    %23 = arith.addf %21, %22 : vector<128x64xf32>
    %cst_15 = arith.constant 0.000000e+00 : f32
    %24 = vector.broadcast %cst_15 : f32 to vector<128x64xf32>
    %25 = arith.maximumf %23, %24 : vector<128x64xf32>
    %26 = vector.shape_cast %25 : vector<128x64xf32> to vector<8x16x64xf32>
    %27 = arith.truncf %26 : vector<8x16x64xf32> to vector<8x16x64xbf16>
    %cst_16 = arith.constant 0.000000e+00 : bf16
    %28 = vector.broadcast %cst_16 : bf16 to vector<8x1x64xbf16>
    %29 = vector.extract_strided_slice %27 {offsets = [0, 0, 0], sizes = [8, 15, 64], strides = [1, 1, 1]} : vector<8x16x64xbf16> to vector<8x15x64xbf16>
    %30 = tpu.concatenate %28, %29 in 1 : vector<8x1x64xbf16>, vector<8x15x64xbf16> -> vector<8x16x64xbf16>
    %31 = vector.extract_strided_slice %27 {offsets = [0, 1, 0], sizes = [8, 15, 64], strides = [1, 1, 1]} : vector<8x16x64xbf16> to vector<8x15x64xbf16>
    %32 = tpu.concatenate %31, %28 in 1 : vector<8x15x64xbf16>, vector<8x1x64xbf16> -> vector<8x16x64xbf16>
    %33 = tpu.concatenate %30, %27, %32 in 2 : vector<8x16x64xbf16>, vector<8x16x64xbf16>, vector<8x16x64xbf16> -> vector<8x16x192xbf16>
    %cst_17 = arith.constant 0.000000e+00 : bf16
    %34 = vector.broadcast %cst_17 : bf16 to vector<1x16x192xbf16>
    %35 = tpu.concatenate %34, %33, %34 in 0 : vector<1x16x192xbf16>, vector<8x16x192xbf16>, vector<1x16x192xbf16> -> vector<10x16x192xbf16>
    %c0_18 = arith.constant 0 : index
    %c0_19 = arith.constant 0 : index
    %36 = vector.load %arg5[%c0_18, %c0_19] : memref<1x64xf32, #tpu.memory_space<vmem>>, vector<1x64xf32>
    %cst_20 = arith.constant 0.000000e+00 : f32
    %37 = vector.broadcast %cst_20 : f32 to vector<128x64xf32>
    %38 = vector.extract_strided_slice %35 {offsets = [0, 0, 0], sizes = [8, 16, 192], strides = [1, 1, 1]} : vector<10x16x192xbf16> to vector<8x16x192xbf16>
    %39 = vector.shape_cast %38 : vector<8x16x192xbf16> to vector<128x192xbf16>
    %c0_21 = arith.constant 0 : index
    %c0_22 = arith.constant 0 : index
    %c0_23 = arith.constant 0 : index
    %40 = vector.load %arg4[%c0_21, %c0_22, %c0_23] : memref<3x192x64xbf16, #tpu.memory_space<vmem>>, vector<1x192x64xbf16>
    %41 = vector.shape_cast %40 : vector<1x192x64xbf16> to vector<192x64xbf16>
    %cst_24 = arith.constant dense<0.000000e+00> : vector<128x64xf32>
    %42 = tpu.matmul %39, %41, %cst_24 {dimension_numbers = #tpu.dot_dimension_numbers<[1], [0], [0], [1], [0, 0, 1, 1], [], []>} : vector<128x192xbf16>, vector<192x64xbf16>, vector<128x64xf32> -> vector<128x64xf32>
    %43 = arith.addf %37, %42 : vector<128x64xf32>
    %44 = vector.extract_strided_slice %35 {offsets = [1, 0, 0], sizes = [8, 16, 192], strides = [1, 1, 1]} : vector<10x16x192xbf16> to vector<8x16x192xbf16>
    %45 = vector.shape_cast %44 : vector<8x16x192xbf16> to vector<128x192xbf16>
    %c1_25 = arith.constant 1 : index
    %c0_26 = arith.constant 0 : index
    %c0_27 = arith.constant 0 : index
    %46 = vector.load %arg4[%c1_25, %c0_26, %c0_27] : memref<3x192x64xbf16, #tpu.memory_space<vmem>>, vector<1x192x64xbf16>
    %47 = vector.shape_cast %46 : vector<1x192x64xbf16> to vector<192x64xbf16>
    %cst_28 = arith.constant dense<0.000000e+00> : vector<128x64xf32>
    %48 = tpu.matmul %45, %47, %cst_28 {dimension_numbers = #tpu.dot_dimension_numbers<[1], [0], [0], [1], [0, 0, 1, 1], [], []>} : vector<128x192xbf16>, vector<192x64xbf16>, vector<128x64xf32> -> vector<128x64xf32>
    %49 = arith.addf %43, %48 : vector<128x64xf32>
    %50 = vector.extract_strided_slice %35 {offsets = [2, 0, 0], sizes = [8, 16, 192], strides = [1, 1, 1]} : vector<10x16x192xbf16> to vector<8x16x192xbf16>
    %51 = vector.shape_cast %50 : vector<8x16x192xbf16> to vector<128x192xbf16>
    %c2_29 = arith.constant 2 : index
    %c0_30 = arith.constant 0 : index
    %c0_31 = arith.constant 0 : index
    %52 = vector.load %arg4[%c2_29, %c0_30, %c0_31] : memref<3x192x64xbf16, #tpu.memory_space<vmem>>, vector<1x192x64xbf16>
    %53 = vector.shape_cast %52 : vector<1x192x64xbf16> to vector<192x64xbf16>
    %cst_32 = arith.constant dense<0.000000e+00> : vector<128x64xf32>
    %54 = tpu.matmul %51, %53, %cst_32 {dimension_numbers = #tpu.dot_dimension_numbers<[1], [0], [0], [1], [0, 0, 1, 1], [], []>} : vector<128x192xbf16>, vector<192x64xbf16>, vector<128x64xf32> -> vector<128x64xf32>
    %55 = arith.addf %49, %54 : vector<128x64xf32>
    %56 = vector.broadcast %36 : vector<1x64xf32> to vector<128x64xf32>
    %57 = arith.addf %55, %56 : vector<128x64xf32>
    %cst_33 = arith.constant 0.000000e+00 : f32
    %58 = vector.broadcast %cst_33 : f32 to vector<128x64xf32>
    %59 = arith.maximumf %57, %58 : vector<128x64xf32>
    %60 = vector.shape_cast %59 : vector<128x64xf32> to vector<8x16x64xf32>
    %61 = vector.shape_cast %60 : vector<8x16x64xf32> to vector<4x2x16x64xf32>
    %62 = vector.extract_strided_slice %61 {offsets = [0, 0, 0, 0], sizes = [4, 1, 16, 64], strides = [1, 1, 1, 1]} : vector<4x2x16x64xf32> to vector<4x1x16x64xf32>
    %63 = vector.shape_cast %62 : vector<4x1x16x64xf32> to vector<4x16x64xf32>
    %64 = vector.extract_strided_slice %61 {offsets = [0, 1, 0, 0], sizes = [4, 1, 16, 64], strides = [1, 1, 1, 1]} : vector<4x2x16x64xf32> to vector<4x1x16x64xf32>
    %65 = vector.shape_cast %64 : vector<4x1x16x64xf32> to vector<4x16x64xf32>
    %66 = arith.maximumf %63, %65 : vector<4x16x64xf32>
    %67 = vector.shape_cast %66 : vector<4x16x64xf32> to vector<4x8x2x64xf32>
    %68 = vector.extract_strided_slice %67 {offsets = [0, 0, 0, 0], sizes = [4, 8, 1, 64], strides = [1, 1, 1, 1]} : vector<4x8x2x64xf32> to vector<4x8x1x64xf32>
    %69 = vector.shape_cast %68 : vector<4x8x1x64xf32> to vector<4x8x64xf32>
    %70 = vector.extract_strided_slice %67 {offsets = [0, 0, 1, 0], sizes = [4, 8, 1, 64], strides = [1, 1, 1, 1]} : vector<4x8x2x64xf32> to vector<4x8x1x64xf32>
    %71 = vector.shape_cast %70 : vector<4x8x1x64xf32> to vector<4x8x64xf32>
    %72 = arith.maximumf %69, %71 : vector<4x8x64xf32>
    %73 = arith.truncf %72 : vector<4x8x64xf32> to vector<4x8x64xbf16>
    %74 = vector.shape_cast %73 : vector<4x8x64xbf16> to vector<1x4x8x64xbf16>
    %c0_34 = arith.constant 0 : index
    %c0_35 = arith.constant 0 : index
    %c0_36 = arith.constant 0 : index
    %c0_37 = arith.constant 0 : index
    %75 = vector.load %arg6[%c0_34, %c0_35, %c0_36, %c0_37] : memref<1x4x8x64xbf16, #tpu.memory_space<vmem>>, vector<1x4x8x64xbf16>
    tpu.vector_store %arg6[%c0_34, %c0_35, %c0_36, %c0_37], %74 {strides = array<i32>} : memref<1x4x8x64xbf16, #tpu.memory_space<vmem>>, vector<1x4x8x64xbf16>,
    return
  }
  func.func @transform_0(%arg0: i32) -> (i32, i32, i32, i32) {
    %c0_i32 = arith.constant 0 : i32
    %c0_i32_0 = arith.constant 0 : i32
    %c0_i32_1 = arith.constant 0 : i32
    %c0_i32_2 = arith.constant 0 : i32
    return %arg0, %c0_i32, %c0_i32_0, %c0_i32_1 : i32, i32, i32, i32
  }
  func.func @transform_1(%arg0: i32) -> (i32, i32, i32) {
    %c0_i32 = arith.constant 0 : i32
    %c0_i32_0 = arith.constant 0 : i32
    %c0_i32_1 = arith.constant 0 : i32
    %c0_i32_2 = arith.constant 0 : i32
    return %c0_i32, %c0_i32_0, %c0_i32_1 : i32, i32, i32
  }
  func.func @transform_2(%arg0: i32) -> (i32, i32) {
    %c0_i32 = arith.constant 0 : i32
    %c0_i32_0 = arith.constant 0 : i32
    %c0_i32_1 = arith.constant 0 : i32
    return %c0_i32, %c0_i32_0 : i32, i32
  }
  func.func @transform_3(%arg0: i32) -> (i32, i32, i32) {
    %c0_i32 = arith.constant 0 : i32
    %c0_i32_0 = arith.constant 0 : i32
    %c0_i32_1 = arith.constant 0 : i32
    %c0_i32_2 = arith.constant 0 : i32
    return %c0_i32, %c0_i32_0, %c0_i32_1 : i32, i32, i32
  }
  func.func @transform_4(%arg0: i32) -> (i32, i32) {
    %c0_i32 = arith.constant 0 : i32
    %c0_i32_0 = arith.constant 0 : i32
    %c0_i32_1 = arith.constant 0 : i32
    return %c0_i32, %c0_i32_0 : i32, i32
  }
  func.func @transform_5(%arg0: i32) -> (i32, i32, i32, i32) {
    %c0_i32 = arith.constant 0 : i32
    %c0_i32_0 = arith.constant 0 : i32
    %c0_i32_1 = arith.constant 0 : i32
    %c0_i32_2 = arith.constant 0 : i32
    return %arg0, %c0_i32, %c0_i32_0, %c0_i32_1 : i32, i32, i32, i32
  }
}

module attributes {stable_mosaic.version = 11 : i64} {
  func.func @_vgg_block_kernel(%arg0: i32, %arg1: memref<1x4x8x64xbf16, #tpu.memory_space<vmem>>, %arg2: memref<3x192x128xbf16, #tpu.memory_space<vmem>>, %arg3: memref<1x128xf32, #tpu.memory_space<vmem>>, %arg4: memref<3x384x128xbf16, #tpu.memory_space<vmem>>, %arg5: memref<1x128xf32, #tpu.memory_space<vmem>>, %arg6: memref<1x2x4x128xf32, #tpu.memory_space<vmem>>) attributes {dimension_semantics = [#tpu.dimension_semantics<parallel>], iteration_bounds = array<i64: 2>, scalar_prefetch = 0 : i64, scratch_operands = 0 : i64, tpu.core_type = #tpu.core_type<tc>, window_params = [{transform_indices = @transform_0, window_bounds = array<i64: 1, 4, 8, 64>}, {pipeline_mode = #tpu.pipeline_mode<synchronous>, transform_indices = @transform_1, window_bounds = array<i64: 3, 192, 128>}, {pipeline_mode = #tpu.pipeline_mode<synchronous>, transform_indices = @transform_2, window_bounds = array<i64: 1, 128>}, {pipeline_mode = #tpu.pipeline_mode<synchronous>, transform_indices = @transform_3, window_bounds = array<i64: 3, 384, 128>}, {pipeline_mode = #tpu.pipeline_mode<synchronous>, transform_indices = @transform_4, window_bounds = array<i64: 1, 128>}, {transform_indices = @transform_5, window_bounds = array<i64: 1, 2, 4, 128>}]} {
    %c0 = arith.constant 0 : index
    %c0_0 = arith.constant 0 : index
    %c0_1 = arith.constant 0 : index
    %c0_2 = arith.constant 0 : index
    %0 = vector.load %arg1[%c0, %c0_0, %c0_1, %c0_2] : memref<1x4x8x64xbf16, #tpu.memory_space<vmem>>, vector<1x4x8x64xbf16>
    %1 = vector.shape_cast %0 : vector<1x4x8x64xbf16> to vector<4x8x64xbf16>
    %cst = arith.constant 0.000000e+00 : bf16
    %2 = vector.broadcast %cst : bf16 to vector<4x1x64xbf16>
    %3 = vector.extract_strided_slice %1 {offsets = [0, 0, 0], sizes = [4, 7, 64], strides = [1, 1, 1]} : vector<4x8x64xbf16> to vector<4x7x64xbf16>
    %4 = tpu.concatenate %2, %3 in 1 : vector<4x1x64xbf16>, vector<4x7x64xbf16> -> vector<4x8x64xbf16>
    %5 = vector.extract_strided_slice %1 {offsets = [0, 1, 0], sizes = [4, 7, 64], strides = [1, 1, 1]} : vector<4x8x64xbf16> to vector<4x7x64xbf16>
    %6 = tpu.concatenate %5, %2 in 1 : vector<4x7x64xbf16>, vector<4x1x64xbf16> -> vector<4x8x64xbf16>
    %7 = tpu.concatenate %4, %1, %6 in 2 : vector<4x8x64xbf16>, vector<4x8x64xbf16>, vector<4x8x64xbf16> -> vector<4x8x192xbf16>
    %cst_3 = arith.constant 0.000000e+00 : bf16
    %8 = vector.broadcast %cst_3 : bf16 to vector<1x8x192xbf16>
    %9 = tpu.concatenate %8, %7, %8 in 0 : vector<1x8x192xbf16>, vector<4x8x192xbf16>, vector<1x8x192xbf16> -> vector<6x8x192xbf16>
    %c0_4 = arith.constant 0 : index
    %c0_5 = arith.constant 0 : index
    %10 = vector.load %arg3[%c0_4, %c0_5] : memref<1x128xf32, #tpu.memory_space<vmem>>, vector<1x128xf32>
    %cst_6 = arith.constant 0.000000e+00 : f32
    %11 = vector.broadcast %cst_6 : f32 to vector<32x128xf32>
    %12 = vector.extract_strided_slice %9 {offsets = [0, 0, 0], sizes = [4, 8, 192], strides = [1, 1, 1]} : vector<6x8x192xbf16> to vector<4x8x192xbf16>
    %13 = vector.shape_cast %12 : vector<4x8x192xbf16> to vector<32x192xbf16>
    %c0_7 = arith.constant 0 : index
    %c0_8 = arith.constant 0 : index
    %c0_9 = arith.constant 0 : index
    %14 = vector.load %arg2[%c0_7, %c0_8, %c0_9] : memref<3x192x128xbf16, #tpu.memory_space<vmem>>, vector<1x192x128xbf16>
    %15 = vector.shape_cast %14 : vector<1x192x128xbf16> to vector<192x128xbf16>
    %cst_10 = arith.constant dense<0.000000e+00> : vector<32x128xf32>
    %16 = tpu.matmul %13, %15, %cst_10 {dimension_numbers = #tpu.dot_dimension_numbers<[1], [0], [0], [1], [0, 0, 1, 1], [], []>} : vector<32x192xbf16>, vector<192x128xbf16>, vector<32x128xf32> -> vector<32x128xf32>
    %17 = arith.addf %11, %16 : vector<32x128xf32>
    %18 = vector.extract_strided_slice %9 {offsets = [1, 0, 0], sizes = [4, 8, 192], strides = [1, 1, 1]} : vector<6x8x192xbf16> to vector<4x8x192xbf16>
    %19 = vector.shape_cast %18 : vector<4x8x192xbf16> to vector<32x192xbf16>
    %c1 = arith.constant 1 : index
    %c0_11 = arith.constant 0 : index
    %c0_12 = arith.constant 0 : index
    %20 = vector.load %arg2[%c1, %c0_11, %c0_12] : memref<3x192x128xbf16, #tpu.memory_space<vmem>>, vector<1x192x128xbf16>
    %21 = vector.shape_cast %20 : vector<1x192x128xbf16> to vector<192x128xbf16>
    %cst_13 = arith.constant dense<0.000000e+00> : vector<32x128xf32>
    %22 = tpu.matmul %19, %21, %cst_13 {dimension_numbers = #tpu.dot_dimension_numbers<[1], [0], [0], [1], [0, 0, 1, 1], [], []>} : vector<32x192xbf16>, vector<192x128xbf16>, vector<32x128xf32> -> vector<32x128xf32>
    %23 = arith.addf %17, %22 : vector<32x128xf32>
    %24 = vector.extract_strided_slice %9 {offsets = [2, 0, 0], sizes = [4, 8, 192], strides = [1, 1, 1]} : vector<6x8x192xbf16> to vector<4x8x192xbf16>
    %25 = vector.shape_cast %24 : vector<4x8x192xbf16> to vector<32x192xbf16>
    %c2 = arith.constant 2 : index
    %c0_14 = arith.constant 0 : index
    %c0_15 = arith.constant 0 : index
    %26 = vector.load %arg2[%c2, %c0_14, %c0_15] : memref<3x192x128xbf16, #tpu.memory_space<vmem>>, vector<1x192x128xbf16>
    %27 = vector.shape_cast %26 : vector<1x192x128xbf16> to vector<192x128xbf16>
    %cst_16 = arith.constant dense<0.000000e+00> : vector<32x128xf32>
    %28 = tpu.matmul %25, %27, %cst_16 {dimension_numbers = #tpu.dot_dimension_numbers<[1], [0], [0], [1], [0, 0, 1, 1], [], []>} : vector<32x192xbf16>, vector<192x128xbf16>, vector<32x128xf32> -> vector<32x128xf32>
    %29 = arith.addf %23, %28 : vector<32x128xf32>
    %30 = vector.broadcast %10 : vector<1x128xf32> to vector<32x128xf32>
    %31 = arith.addf %29, %30 : vector<32x128xf32>
    %cst_17 = arith.constant 0.000000e+00 : f32
    %32 = vector.broadcast %cst_17 : f32 to vector<32x128xf32>
    %33 = arith.maximumf %31, %32 : vector<32x128xf32>
    %34 = vector.shape_cast %33 : vector<32x128xf32> to vector<4x8x128xf32>
    %35 = arith.truncf %34 : vector<4x8x128xf32> to vector<4x8x128xbf16>
    %cst_18 = arith.constant 0.000000e+00 : bf16
    %36 = vector.broadcast %cst_18 : bf16 to vector<4x1x128xbf16>
    %37 = vector.extract_strided_slice %35 {offsets = [0, 0, 0], sizes = [4, 7, 128], strides = [1, 1, 1]} : vector<4x8x128xbf16> to vector<4x7x128xbf16>
    %38 = tpu.concatenate %36, %37 in 1 : vector<4x1x128xbf16>, vector<4x7x128xbf16> -> vector<4x8x128xbf16>
    %39 = vector.extract_strided_slice %35 {offsets = [0, 1, 0], sizes = [4, 7, 128], strides = [1, 1, 1]} : vector<4x8x128xbf16> to vector<4x7x128xbf16>
    %40 = tpu.concatenate %39, %36 in 1 : vector<4x7x128xbf16>, vector<4x1x128xbf16> -> vector<4x8x128xbf16>
    %41 = tpu.concatenate %38, %35, %40 in 2 : vector<4x8x128xbf16>, vector<4x8x128xbf16>, vector<4x8x128xbf16> -> vector<4x8x384xbf16>
    %cst_19 = arith.constant 0.000000e+00 : bf16
    %42 = vector.broadcast %cst_19 : bf16 to vector<1x8x384xbf16>
    %43 = tpu.concatenate %42, %41, %42 in 0 : vector<1x8x384xbf16>, vector<4x8x384xbf16>, vector<1x8x384xbf16> -> vector<6x8x384xbf16>
    %c0_20 = arith.constant 0 : index
    %c0_21 = arith.constant 0 : index
    %44 = vector.load %arg5[%c0_20, %c0_21] : memref<1x128xf32, #tpu.memory_space<vmem>>, vector<1x128xf32>
    %cst_22 = arith.constant 0.000000e+00 : f32
    %45 = vector.broadcast %cst_22 : f32 to vector<32x128xf32>
    %46 = vector.extract_strided_slice %43 {offsets = [0, 0, 0], sizes = [4, 8, 384], strides = [1, 1, 1]} : vector<6x8x384xbf16> to vector<4x8x384xbf16>
    %47 = vector.shape_cast %46 : vector<4x8x384xbf16> to vector<32x384xbf16>
    %c0_23 = arith.constant 0 : index
    %c0_24 = arith.constant 0 : index
    %c0_25 = arith.constant 0 : index
    %48 = vector.load %arg4[%c0_23, %c0_24, %c0_25] : memref<3x384x128xbf16, #tpu.memory_space<vmem>>, vector<1x384x128xbf16>
    %49 = vector.shape_cast %48 : vector<1x384x128xbf16> to vector<384x128xbf16>
    %cst_26 = arith.constant dense<0.000000e+00> : vector<32x128xf32>
    %50 = tpu.matmul %47, %49, %cst_26 {dimension_numbers = #tpu.dot_dimension_numbers<[1], [0], [0], [1], [0, 0, 1, 1], [], []>} : vector<32x384xbf16>, vector<384x128xbf16>, vector<32x128xf32> -> vector<32x128xf32>
    %51 = arith.addf %45, %50 : vector<32x128xf32>
    %52 = vector.extract_strided_slice %43 {offsets = [1, 0, 0], sizes = [4, 8, 384], strides = [1, 1, 1]} : vector<6x8x384xbf16> to vector<4x8x384xbf16>
    %53 = vector.shape_cast %52 : vector<4x8x384xbf16> to vector<32x384xbf16>
    %c1_27 = arith.constant 1 : index
    %c0_28 = arith.constant 0 : index
    %c0_29 = arith.constant 0 : index
    %54 = vector.load %arg4[%c1_27, %c0_28, %c0_29] : memref<3x384x128xbf16, #tpu.memory_space<vmem>>, vector<1x384x128xbf16>
    %55 = vector.shape_cast %54 : vector<1x384x128xbf16> to vector<384x128xbf16>
    %cst_30 = arith.constant dense<0.000000e+00> : vector<32x128xf32>
    %56 = tpu.matmul %53, %55, %cst_30 {dimension_numbers = #tpu.dot_dimension_numbers<[1], [0], [0], [1], [0, 0, 1, 1], [], []>} : vector<32x384xbf16>, vector<384x128xbf16>, vector<32x128xf32> -> vector<32x128xf32>
    %57 = arith.addf %51, %56 : vector<32x128xf32>
    %58 = vector.extract_strided_slice %43 {offsets = [2, 0, 0], sizes = [4, 8, 384], strides = [1, 1, 1]} : vector<6x8x384xbf16> to vector<4x8x384xbf16>
    %59 = vector.shape_cast %58 : vector<4x8x384xbf16> to vector<32x384xbf16>
    %c2_31 = arith.constant 2 : index
    %c0_32 = arith.constant 0 : index
    %c0_33 = arith.constant 0 : index
    %60 = vector.load %arg4[%c2_31, %c0_32, %c0_33] : memref<3x384x128xbf16, #tpu.memory_space<vmem>>, vector<1x384x128xbf16>
    %61 = vector.shape_cast %60 : vector<1x384x128xbf16> to vector<384x128xbf16>
    %cst_34 = arith.constant dense<0.000000e+00> : vector<32x128xf32>
    %62 = tpu.matmul %59, %61, %cst_34 {dimension_numbers = #tpu.dot_dimension_numbers<[1], [0], [0], [1], [0, 0, 1, 1], [], []>} : vector<32x384xbf16>, vector<384x128xbf16>, vector<32x128xf32> -> vector<32x128xf32>
    %63 = arith.addf %57, %62 : vector<32x128xf32>
    %64 = vector.broadcast %44 : vector<1x128xf32> to vector<32x128xf32>
    %65 = arith.addf %63, %64 : vector<32x128xf32>
    %cst_35 = arith.constant 0.000000e+00 : f32
    %66 = vector.broadcast %cst_35 : f32 to vector<32x128xf32>
    %67 = arith.maximumf %65, %66 : vector<32x128xf32>
    %68 = vector.shape_cast %67 : vector<32x128xf32> to vector<4x8x128xf32>
    %69 = vector.shape_cast %68 : vector<4x8x128xf32> to vector<2x2x8x128xf32>
    %70 = vector.extract_strided_slice %69 {offsets = [0, 0, 0, 0], sizes = [2, 1, 8, 128], strides = [1, 1, 1, 1]} : vector<2x2x8x128xf32> to vector<2x1x8x128xf32>
    %71 = vector.shape_cast %70 : vector<2x1x8x128xf32> to vector<2x8x128xf32>
    %72 = vector.extract_strided_slice %69 {offsets = [0, 1, 0, 0], sizes = [2, 1, 8, 128], strides = [1, 1, 1, 1]} : vector<2x2x8x128xf32> to vector<2x1x8x128xf32>
    %73 = vector.shape_cast %72 : vector<2x1x8x128xf32> to vector<2x8x128xf32>
    %74 = arith.maximumf %71, %73 : vector<2x8x128xf32>
    %75 = vector.shape_cast %74 : vector<2x8x128xf32> to vector<2x4x2x128xf32>
    %76 = vector.extract_strided_slice %75 {offsets = [0, 0, 0, 0], sizes = [2, 4, 1, 128], strides = [1, 1, 1, 1]} : vector<2x4x2x128xf32> to vector<2x4x1x128xf32>
    %77 = vector.shape_cast %76 : vector<2x4x1x128xf32> to vector<2x4x128xf32>
    %78 = vector.extract_strided_slice %75 {offsets = [0, 0, 1, 0], sizes = [2, 4, 1, 128], strides = [1, 1, 1, 1]} : vector<2x4x2x128xf32> to vector<2x4x1x128xf32>
    %79 = vector.shape_cast %78 : vector<2x4x1x128xf32> to vector<2x4x128xf32>
    %80 = arith.maximumf %77, %79 : vector<2x4x128xf32>
    %81 = vector.shape_cast %80 : vector<2x4x128xf32> to vector<1x2x4x128xf32>
    %c0_36 = arith.constant 0 : index
    %c0_37 = arith.constant 0 : index
    %c0_38 = arith.constant 0 : index
    %c0_39 = arith.constant 0 : index
    %82 = vector.load %arg6[%c0_36, %c0_37, %c0_38, %c0_39] : memref<1x2x4x128xf32, #tpu.memory_space<vmem>>, vector<1x2x4x128xf32>
    tpu.vector_store %arg6[%c0_36, %c0_37, %c0_38, %c0_39], %81 {strides = array<i32>} : memref<1x2x4x128xf32, #tpu.memory_space<vmem>>, vector<1x2x4x128xf32>,
    return
  }
  func.func @transform_0(%arg0: i32) -> (i32, i32, i32, i32) {
    %c0_i32 = arith.constant 0 : i32
    %c0_i32_0 = arith.constant 0 : i32
    %c0_i32_1 = arith.constant 0 : i32
    %c0_i32_2 = arith.constant 0 : i32
    return %arg0, %c0_i32, %c0_i32_0, %c0_i32_1 : i32, i32, i32, i32
  }
  func.func @transform_1(%arg0: i32) -> (i32, i32, i32) {
    %c0_i32 = arith.constant 0 : i32
    %c0_i32_0 = arith.constant 0 : i32
    %c0_i32_1 = arith.constant 0 : i32
    %c0_i32_2 = arith.constant 0 : i32
    return %c0_i32, %c0_i32_0, %c0_i32_1 : i32, i32, i32
  }
  func.func @transform_2(%arg0: i32) -> (i32, i32) {
    %c0_i32 = arith.constant 0 : i32
    %c0_i32_0 = arith.constant 0 : i32
    %c0_i32_1 = arith.constant 0 : i32
    return %c0_i32, %c0_i32_0 : i32, i32
  }
  func.func @transform_3(%arg0: i32) -> (i32, i32, i32) {
    %c0_i32 = arith.constant 0 : i32
    %c0_i32_0 = arith.constant 0 : i32
    %c0_i32_1 = arith.constant 0 : i32
    %c0_i32_2 = arith.constant 0 : i32
    return %c0_i32, %c0_i32_0, %c0_i32_1 : i32, i32, i32
  }
  func.func @transform_4(%arg0: i32) -> (i32, i32) {
    %c0_i32 = arith.constant 0 : i32
    %c0_i32_0 = arith.constant 0 : i32
    %c0_i32_1 = arith.constant 0 : i32
    return %c0_i32, %c0_i32_0 : i32, i32
  }
  func.func @transform_5(%arg0: i32) -> (i32, i32, i32, i32) {
    %c0_i32 = arith.constant 0 : i32
    %c0_i32_0 = arith.constant 0 : i32
    %c0_i32_1 = arith.constant 0 : i32
    %c0_i32_2 = arith.constant 0 : i32
    return %arg0, %c0_i32, %c0_i32_0, %c0_i32_1 : i32, i32, i32, i32
  }
}

</mosaic_0001>

<bundles_post_ra>
// kernel: onnx_vgg2l_forward.2
= control target key start
LH: loop header
LB: loop body
LE: loop exit
PB: predicated region body
PF: predicated region fallthrough
CT: control target
= control target key end

     0   :  { %s2587_s18 = smov 0   ;;  %s3311_s0 = inlined_call_operand.vmem [shape: bf16[2,10,16,8], index: 0, kind: input, shape index: {}]   ;;  %s3312_s1 = inlined_call_operand.vmem [shape: bf16[3,8,64], index: 1, kind: input, shape index: {}]   ;;  %s3313_s2 = inlined_call_operand.vmem [shape: f32[1,64], index: 2, kind: input, shape index: {}]   ;;  %s3314_s3 = inlined_call_operand.vmem [shape: bf16[3,192,64], index: 3, kind: input, shape index: {}]   ;;  %s3315_s4 = inlined_call_operand.vmem [shape: f32[1,64], index: 4, kind: input, shape index: {}]   ;;  %s3316_s5 = inlined_call_operand.vmem [shape: bf16[2,4,8,64], index: 5, kind: output, shape index: {}]  }
   0x1 LB: > { %s2129_s19 = sadd.s32 4294967295, %s2552_s18   ;;  %p2133_p0 = scmp.ge.s32.totalorder %s2552_s18, 1  ;;  %s2552_s18 = sphi %s2587_s18, %s15_s18  }
   0x2   : > { %p187_p1 = scmp.lt.s32.totalorder %s2552_s18, 3 }
   0x4   : > { %p188_p2 = pnand %p2133_p0, %p187_p1 }
   0x5   : > { %p215_p3 = scmp.lt.s32.totalorder (!%p188_p2), %s2129_s19, 1  ;;  %s2555_s15 = smov (!%p188_p2), 64  }
   0x6   : > { %191 = sbr.rel (%p188_p2) target bundleno = 715 (0x2cb), region = 40 }
   0xb   : > { %v2137_v0 = vld [vmem:[%s3312_s1 + $0x4] sm:$0xf]  ;;  %vm315_vm0 = vcmask 1043456   ;;  %v247_v1 = vld [vmem:[%s3312_s1] sm:$0xf]  ;;  %s3322_s19 = smov (!%p215_p3, %s2129_s19), 1 }
   0xc   : > { %2485 = vmatprep.subr.msk.bf16.mxu0 %vm315_vm0, %v2137_v0  ;;  %v317_v2 = vsel %vm315_vm0, %v2137_v0, 0  ;;  %2486 = vmatprep.subr.msk.bf16.mxu1 %vm315_vm0, %v247_v1  ;;  %v425_v3 = vsel %vm315_vm0, %v247_v1, 0  ;;  %v2163_v4 = vld [vmem:[%s3312_s1 + $0x8] sm:$0xf]  ;;  %s2488_s26 = smul.u32 80, %s3322_s19  ;;  %vm290_vm1 = vcmask 64512  }
   0xd   : > { %2408 = vmatpush3.bf16.msra.mxu0 %v317_v2  ;;  %2426 = vmatpush3.bf16.msra.mxu1 %v425_v3  ;;  %v535_v8 = vsel %vm315_vm0, %v2163_v4, 0  ;;  %v2510_v16 = vld [vmem:[%s3314_s3 + $0x38] sm:$0xff]   ;;  %v2554_v17 = vmov 0   ;;  %v2511_v18 = vld [vmem:[%s3314_s3 + $0x30] sm:$0xff]   ;;  %v2512_v19 = vld [vmem:[%s3314_s3 + $0x28] sm:$0xff]   ;;  %vm795_vm2 = vcmask 1047552  }
   0xe   : > { %2487 = vmatprep.subr.msk.bf16.mxu0 %vm315_vm0, %v2163_v4  ;;  %s2615_s29 = scalar_lea.vmem %s3311_s0, %s2488_s26  ;;  %1009 = vmatprep.subr.bf16.mxu1 %v2554_v17  ;;  %v2513_v20 = vld [vmem:[%s3314_s3 + $0x20] sm:$0xff]   ;;  %v2514_v21 = vld [vmem:[%s3314_s3 + $0x18] sm:$0xff]   ;;  %v2515_v22 = vld [vmem:[%s3314_s3 + $0x10] sm:$0xff]   ;;  %vm796_vm3 = vsmask.f32 7424  ;;  %vm830_vm4 = vcmask 523264  }
   0xf   : > { %v2500_v5 = vld [vmem:[%s2615_s29 + $0x8] sm:$0xff]   ;;  %v2501_v6 = vld [vmem:[%s2615_s29] sm:$0xff]   ;;  %v2502_v7 = vld [vmem:[%s2615_s29 + $0x10] sm:$0xff]   ;;  %vm760_vm6 = vcmask 1040384   ;;  %vm761_vm7 = vsmask.f32 256 }
  0x10   : > { %2409 = vmatprep.mubr.msk.bf16.mxu0 %vm290_vm1, %v2500_v5  ;;  %2427 = vmatprep.mubr.msk.bf16.mxu1 %vm290_vm1, %v2501_v6  ;;  %v2503_v9 = vld [vmem:[%s2615_s29 + $0x18] sm:$0xff]   ;;  %v2504_v10 = vld [vmem:[%s2615_s29 + $0x20] sm:$0xff]   ;;  %v2505_v11 = vld [vmem:[%s2615_s29 + $0x28] sm:$0xff]   ;;  %vm1999_vm9 = vcmask 1041409   ;;  %vm2002_vm10 = vcmask 1042434   ;;  %vm2005_vm11 = vcmask 1043459  }
  0x11   : > { %2410 = vmatmul.mubr.msk.bf16.vlgmr.msra.gmra.mxu0 %vm290_vm1, %v2502_v7  ;;  %2428 = vmatmul.mubr.msk.bf16.vlgmr.msra.gmra.mxu1 %vm290_vm1, %v2500_v5  ;;  %v2506_v12 = vld [vmem:[%s2615_s29 + $0x30] sm:$0xff]   ;;  %v2507_v13 = vld [vmem:[%s2615_s29 + $0x38] sm:$0xff]   ;;  %v2508_v14 = vld [vmem:[%s2615_s29 + $0x40] sm:$0xff]   ;;  %vm2008_vm12 = vcmask 1044484   ;;  %vm2011_vm13 = vcmask 1045509   ;;  %vm2014_vm14 = vcmask 1046534  }
  0x12   : > { %2444 = vmatpush3.bf16.msra.mxu0 %v535_v8  ;;  %2413 = vmatprep.mubr.msk.bf16.mxu0 %vm290_vm1, %v2503_v9  ;;  %v2509_v15 = vld [vmem:[%s2615_s29 + $0x48] sm:$0xff]   ;;  %v2517_v24 = vld [vmem:[%s3314_s3] sm:$0xff]   ;;  %v2518_v25 = vld [vmem:[%s3314_s3 + $0x58] sm:$0xff]   ;;  %vm2017_vm15 = vcmask 1047559   ;;  %vm2069_vm0 = vcmask 519168   ;;  %s2347_s13 = sshll.u32 %s3322_s19, 4 }
  0x13   : > { %2431 = vmatprep.mubr.msk.bf16.mxu1 %vm290_vm1, %v2502_v7  ;;  %1181 = vmatprep.subr.bf16.mxu0 %v2554_v17  ;;  %v2516_v23 = vld [vmem:[%s3314_s3 + $0x8] sm:$0xff]   ;;  %v2519_v26 = vld [vmem:[%s3314_s3 + $0x50] sm:$0xff]   ;;  %v2521_v28 = vld [vmem:[%s3314_s3 + $0x40] sm:$0xff]  }
  0x14   : > { %v2520_v27 = vld [vmem:[%s3314_s3 + $0x48] sm:$0xff]   ;;  %v2522_v29 = vld [vmem:[%s3314_s3 + $0x98] sm:$0xff]   ;;  %v2523_v30 = vld [vmem:[%s3314_s3 + $0x90] sm:$0xff]  }
  0x15   : > { %1010 = vmatpush1.bf16.msra.mxu1 %v2522_v29  ;;  %v2524_v31 = vld [vmem:[%s3314_s3 + $0x88] sm:$0xff]   ;;  %v2525_v32 = vld [vmem:[%s3314_s3 + $0x80] sm:$0xff]   ;;  %v2526_v33 = vld [vmem:[%s3314_s3 + $0x78] sm:$0xff]  }
  0x16   : > { %1011 = vmatprep.subr.bf16.mxu1 %v2554_v17  ;;  %v2527_v34 = vld [vmem:[%s3314_s3 + $0x70] sm:$0xff]   ;;  %v2528_v35 = vld [vmem:[%s3314_s3 + $0x68] sm:$0xff]   ;;  %v2529_v36 = vld [vmem:[%s3314_s3 + $0x60] sm:$0xff]  }
  0x17   : > { %v2530_v37 = vld [vmem:[%s3314_s3 + $0xb8] sm:$0xff]   ;;  %v2531_v38 = vld [vmem:[%s3314_s3 + $0xb0] sm:$0xff]   ;;  %v2532_v39 = vld [vmem:[%s3314_s3 + $0xa8] sm:$0xff]  }
  0x18   : > { %v2533_v40 = vld [vmem:[%s3314_s3 + $0xa0] sm:$0xff]   ;;  %vm2810_vm5 = vmand %vm795_vm2, %vm796_vm3 }
  0x19   : > { %2414 = vmatmul.mubr.msk.bf16.gmra.mxu0 %vm290_vm1, %v2504_v10  ;;  %2432 = vmatmul.mubr.msk.bf16.gmra.mxu1 %vm290_vm1, %v2503_v9  ;;  %vm2995_vm8 = vmand %vm760_vm6, %vm761_vm7 }
  0x1a   : > { %2417 = vmatprep.mubr.msk.bf16.mxu0 %vm290_vm1, %v2505_v11  ;;  %2435 = vmatprep.mubr.msk.bf16.mxu1 %vm290_vm1, %v2504_v10 }
  0x1b   : > { %1012 = vmatpush1.bf16.msra.mxu1 %v2523_v30 }
  0x1c   : > { %1013 = vmatprep.subr.bf16.mxu1 %v2554_v17 }
  0x1f   : > { %1014 = vmatpush1.bf16.msra.mxu1 %v2524_v31 }
  0x20   : > { %1015 = vmatprep.subr.bf16.mxu1 %v2554_v17 }
  0x21   : > { %2418 = vmatmul.mubr.msk.bf16.gmra.mxu0 %vm290_vm1, %v2506_v12  ;;  %2436 = vmatmul.mubr.msk.bf16.gmra.mxu1 %vm290_vm1, %v2505_v11 }
  0x22   : > { %2421 = vmatprep.mubr.msk.bf16.mxu0 %vm290_vm1, %v2507_v13  ;;  %2439 = vmatprep.mubr.msk.bf16.mxu1 %vm290_vm1, %v2506_v12 }
  0x23   : > { %1016 = vmatpush1.bf16.msra.mxu1 %v2525_v32  ;;  %v2787_v32 = vld [vmem:[%s3314_s3 + $0xf0] sm:$0xff]  }
  0x24   : > { %1017 = vmatprep.subr.bf16.mxu1 %v2554_v17 }
  0x27   : > { %1018 = vmatpush1.bf16.msra.mxu1 %v2526_v33 }
  0x28   : > { %1019 = vmatprep.subr.bf16.mxu1 %v2554_v17 }
  0x29   : > { %2422 = vmatmul.mubr.msk.bf16.gmra.mxu0 %vm290_vm1, %v2508_v14  ;;  %2440 = vmatmul.mubr.msk.bf16.gmra.mxu1 %vm290_vm1, %v2507_v13 }
  0x2a   : > { %2445 = vmatprep.mubr.msk.bf16.mxu0 %vm290_vm1, %v2502_v7  ;;  %v2771_v7 = vld [vmem:[%s3313_s2] ss:$0 sm:$0xff] }
  0x2b   : > { %1020 = vmatpush1.bf16.msra.mxu1 %v2527_v34 }
  0x2c   : > { %1021 = vmatprep.subr.bf16.mxu1 %v2554_v17 }
  0x2f   : > { %1022 = vmatpush1.bf16.msra.mxu1 %v2528_v35 }
  0x30   : > { %1023 = vmatprep.subr.bf16.mxu1 %v2554_v17 }
  0x31   : > { %2446 = vmatmul.mubr.msk.bf16.vlgmr.msra.gmra.mxu0 %vm290_vm1, %v2503_v9 }
  0x32   : > { %2449 = vmatprep.mubr.msk.bf16.mxu0 %vm290_vm1, %v2504_v10  ;;  %1182 = vmatpush1.bf16.msra.mxu0 %v2510_v16 }
  0x33   : > { %1183 = vmatprep.subr.bf16.mxu0 %v2554_v17  ;;  %1024 = vmatpush1.bf16.msra.mxu1 %v2529_v36 }
  0x34   : > { %1033 = vmatprep.subr.bf16.mxu1 %v2554_v17 }
  0x36   : > { %1184 = vmatpush1.bf16.msra.mxu0 %v2511_v18 }
  0x37   : > { %1185 = vmatprep.subr.bf16.mxu0 %v2554_v17  ;;  %1034 = vmatpush2.bf16.msra.mxu1 %v2530_v37 }
  0x38   : > { %1035 = vmatprep.subr.bf16.mxu1 %v2554_v17 }
  0x39   : > { %2450 = vmatmul.mubr.msk.bf16.gmra.mxu0 %vm290_vm1, %v2505_v11  ;;  %v2776_v11 = vld [vmem:[%s3314_s3 + $0xf8] sm:$0xff]  }
  0x3a   : > { %2453 = vmatprep.mubr.msk.bf16.mxu0 %vm290_vm1, %v2506_v12  ;;  %1186 = vmatpush1.bf16.msra.mxu0 %v2512_v19 }
  0x3b   : > { %1187 = vmatprep.subr.bf16.mxu0 %v2554_v17  ;;  %1036 = vmatpush2.bf16.msra.mxu1 %v2531_v38 }
  0x3c   : > { %1037 = vmatprep.subr.bf16.mxu1 %v2554_v17 }
  0x3e   : > { %1188 = vmatpush1.bf16.msra.mxu0 %v2513_v20 }
  0x3f   : > { %1189 = vmatprep.subr.bf16.mxu0 %v2554_v17  ;;  %1038 = vmatpush2.bf16.msra.mxu1 %v2532_v39 }
  0x40   : > { %1039 = vmatprep.subr.bf16.mxu1 %v2554_v17 }
  0x41   : > { %2454 = vmatmul.mubr.msk.bf16.gmra.mxu0 %vm290_vm1, %v2507_v13 }
  0x42   : > { %2457 = vmatprep.mubr.msk.bf16.mxu0 %vm290_vm1, %v2508_v14  ;;  %1190 = vmatpush1.bf16.msra.mxu0 %v2514_v21 }
  0x43   : > { %1191 = vmatprep.subr.bf16.mxu0 %v2554_v17  ;;  %1040 = vmatpush2.bf16.msra.mxu1 %v2533_v40 }
  0x44   : > { %2461 = vmatprep.subr.bf16.mxu1 %v2554_v17 }
  0x46   : > { %1192 = vmatpush1.bf16.msra.mxu0 %v2515_v22 }
  0x47   : > { %1193 = vmatprep.subr.bf16.mxu0 %v2554_v17 }
  0x49   : > { %2458 = vmatmul.mubr.msk.bf16.gmra.mxu0 %vm290_vm1, %v2509_v15 }
  0x4a   : > { %1213 = vmatprep.mubr.bf16.mxu0 %v2554_v17  ;;  %1194 = vmatpush1.bf16.msra.mxu0 %v2516_v23 }
  0x4b   : > { %1195 = vmatprep.subr.bf16.mxu0 %v2554_v17 }
  0x4e   : > { %1196 = vmatpush1.bf16.msra.mxu0 %v2517_v24 }
  0x4f   : > { %1205 = vmatprep.subr.bf16.mxu0 %v2554_v17 }
  0x52   : > { %1206 = vmatpush2.bf16.msra.mxu0 %v2518_v25 }
  0x53   : > { %1207 = vmatprep.subr.bf16.mxu0 %v2554_v17 }
  0x56   : > { %1208 = vmatpush2.bf16.msra.mxu0 %v2519_v26 }
  0x57   : > { %1209 = vmatprep.subr.bf16.mxu0 %v2554_v17 }
  0x5a   : > { %1210 = vmatpush2.bf16.msra.mxu0 %v2520_v27 }
  0x5b   : > { %1211 = vmatprep.subr.bf16.mxu0 %v2554_v17 }
  0x5e   : > { %1212 = vmatpush2.bf16.msra.mxu0 %v2521_v28 }
  0x5f   : > { %1375 = vmatprep.subr.bf16.mxu0 %v2554_v17 }
  0x61   : > { %1214 = vmatmul.mubr.bf16.vlgmr.msra.gmra.mxu0 %v2554_v17 }
  0x62   : > { %1376 = vmatpush1.bf16.msra.mxu0 %v2776_v11 }
  0x63   : > { %1377 = vmatprep.subr.bf16.mxu0 %v2554_v17 }
  0x66   : > { %1378 = vmatpush1.bf16.msra.mxu0 %v2787_v32 }
  0x67   : > { %1379 = vmatprep.subr.bf16.mxu0 %v2554_v17 }
  0xd1   : > { %v2411_v41 = vpop.f32.mrf.mxu0  ;;  %v2429_v42 = vpop.f32.mrf.mxu1 }
  0xd2   : > { %v470_v2 = vadd.f32 %v2429_v42, %v2411_v41 }
  0xd3   : > { %v353_v43 = vpop.f32.mrf.mxu0  ;;  %v461_v44 = vpop.f32.mrf.mxu1 }
  0xd4   : > { %v462_v4 = vadd.f32 %v461_v44, %v353_v43 }
  0xd5   : > { %v2412_v45 = vpop.f32.mrf.mxu0  ;;  %v2430_v46 = vpop.f32.mrf.mxu1 }
  0xd6   : > { %v473_v9 = vadd.f32 %v2430_v46, %v2412_v45  ;;  %v2798_v46 = vld [vmem:[%s3314_s3 + $0xe8] sm:$0xff]  }
  0xd7   : > { %v356_v47 = vpop.f32.mrf.mxu0  ;;  %v464_v49 = vpop.f32.mrf.mxu1  ;;  %1380 = vmatpush1.bf16.msra.mxu0 %v2798_v46 }
  0xd8   : > { %v465_v13 = vadd.f32 %v464_v49, %v356_v47  ;;  %1381 = vmatprep.subr.bf16.mxu0 %v2554_v17 }
  0xd9   : > { %v2415_v48 = vpop.f32.mrf.mxu0  ;;  %v2433_v52 = vpop.f32.mrf.mxu1 }
  0xda   : > { %v486_v22 = vadd.f32 %v2433_v52, %v2415_v48 }
  0xdb   : > { %v369_v50 = vpop.f32.mrf.mxu0  ;;  %v477_v55 = vpop.f32.mrf.mxu1 }
  0xdc   : > { %v478_v24 = vadd.f32 %v477_v55, %v369_v50 }
  0xdd   : > { %v2416_v51 = vpop.f32.mrf.mxu0  ;;  %v2434_v58 = vpop.f32.mrf.mxu1 }
  0xde   : > { %v489_v28 = vadd.f32 %v2434_v58, %v2416_v51 }
  0xdf   : > { %v372_v53 = vpop.f32.mrf.mxu0  ;;  %v480_v61 = vpop.f32.mrf.mxu1 }
  0xe0   : > { %v481_v38 = vadd.f32 %v480_v61, %v372_v53 }
  0xe1   : > { %v2419_v54 = vpop.f32.mrf.mxu0  ;;  %v2437_v0 = vpop.f32.mrf.mxu1 }
  0xe2   : > { %v502_v41 = vadd.f32 %v2437_v0, %v2419_v54 }
  0xe3   : > { %v2752_v56 = vpop.f32.mrf.mxu0  ;;  %v2766_v6 = vpop.f32.mrf.mxu1 }
  0xe5   : > { %v2754_v57 = vpop.f32.mrf.mxu0  ;;  %v2438_v16 = vpop.f32.mrf.mxu1 }
  0xe7   : > { %v2756_v59 = vpop.f32.mrf.mxu0  ;;  %v496_v29 = vpop.f32.mrf.mxu1 }
  0xe9   : > { %v2758_v60 = vpop.f32.mrf.mxu0  ;;  %v2441_v42 = vpop.f32.mrf.mxu1 }
  0xeb   : > { %v2760_v62 = vpop.f32.mrf.mxu0 }
  0xed   : > { %v2762_v63 = vpop.f32.mrf.mxu0 }
  0xef   : > { %v2764_v1 = vpop.f32.mrf.mxu0 }
  0xf1   : > { %v2447_v3 = vpop.f32.mrf.mxu0 }
  0xf2   : > { %v636_v5 = vadd.f32 %v2447_v3, %v470_v2  ;;  %v494_v3 = vadd.f32 %v2766_v6, %v2752_v56  ;;  %v2987_v2 = vld [vmem:[%s3314_s3 + $0x100] sm:$0xff]  }
  0xf3   : > { %v571_v8 = vpop.f32.mrf.mxu0 }
  0xf4   : > { %v634_v10 = vadd.f32 %v571_v8, %v462_v4  ;;  %v658_v14 = vadd.f32 %v2771_v7, %v636_v5  ;;  %v509_v4 = vpop.f32.mrf.mxu1 }
  0xf5   : > { %v2448_v12 = vpop.f32.mrf.mxu0 }
  0xf6   : > { %v637_v15 = vadd.f32 %v2448_v12, %v473_v9  ;;  %v656_v19 = vadd.f32 %v2771_v7, %v634_v10  ;;  %v674_v25 = vmax.f32 %v658_v14, 0.0  ;;  %v505_v12 = vadd.f32 %v2438_v16, %v2754_v57 }
  0xf7   : > { %v574_v18 = vpop.f32.mrf.mxu0  ;;  %v497_v16 = vadd.f32 %v496_v29, %v2756_v59  ;;  %v518_v59 = vadd.f32 %v2441_v42, %v2758_v60 }
  0xf8   : > { %v659_v20 = vadd.f32 %v2771_v7, %v637_v15  ;;  %v635_v21 = vadd.f32 %v574_v18, %v465_v13  ;;  %v672_v33 = vmax.f32 %v656_v19, 0.0  ;;  %v2825_v18 = vld [vmem:[%s3314_s3 + $0xe0] sm:$0xff]  }
  0xf9   : > { %v2451_v23 = vpop.f32.mrf.mxu0  ;;  %1382 = vmatpush1.bf16.msra.mxu0 %v2825_v18 }
  0xfa   : > { %v675_v26 = vmax.f32 %v659_v20, 0.0  ;;  %v657_v27 = vadd.f32 %v2771_v7, %v635_v21  ;;  %v640_v30 = vadd.f32 %v2451_v23, %v486_v22  ;;  %1383 = vmatprep.subr.bf16.mxu0 %v2554_v17 }
  0xfb   : > { %v587_v31 = vpop.f32.mrf.mxu0 }
  0xfc   : > { %v673_v34 = vmax.f32 %v657_v27, 0.0  ;;  %v638_v35 = vadd.f32 %v587_v31, %v478_v24  ;;  %v2789_v36 = vpack.c.bf16 %v675_v26, %v674_v25  ;;  %v662_v43 = vadd.f32 %v2771_v7, %v640_v30  ;;  %v2442_v24 = vpop.f32.mrf.mxu1 }
  0xfd   : > { %v2452_v37 = vpop.f32.mrf.mxu0 }
  0xfe   : > { %v641_v39 = vadd.f32 %v2452_v37, %v489_v28  ;;  %v688_v40 = vpack.c.bf16 %v673_v34, %v672_v33  ;;  %v707_v45 = vshll.u32 %v2789_v36, 16  ;;  %v660_v47 = vadd.f32 %v2771_v7, %v638_v35 }
  0xff   : > { %v590_v44 = vpop.f32.mrf.mxu0  ;;  %v704_v53 = vshrl.u32 %v2789_v36, 16  ;;  %v678_v5 = vmax.f32 %v662_v43, 0.0  ;;  %v510_v28 = vadd.f32 %v509_v4, %v2760_v62 }
 0x100   : > { %v663_v48 = vadd.f32 %v2771_v7, %v641_v39  ;;  %v639_v49 = vadd.f32 %v590_v44, %v481_v38  ;;  %814 = vrot.lane.b32.xlu0 %v688_v40, %s2555_s15  ;;  %v700_v50 = vshll.u32 %v688_v40, 16  ;;  %v697_v52 = vshrl.u32 %v688_v40, 16  ;;  %v2860_v40 = vld [vmem:[%s3314_s3 + $0xd8] sm:$0xff]  }
 0x101   : > { %v2455_v51 = vpop.f32.mrf.mxu0  ;;  %v773_v54 = vrot.slane %v707_v45, 1  ;;  %v676_v13 = vmax.f32 %v660_v47, 0.0  ;;  %1384 = vmatpush1.bf16.msra.mxu0 %v2860_v40 }
 0x102   : > { %v679_v55 = vmax.f32 %v663_v48, 0.0  ;;  %v661_v58 = vadd.f32 %v2771_v7, %v639_v49  ;;  %v644_v61 = vadd.f32 %v2455_v51, %v502_v41  ;;  %v771_v0 = vrot.slane %v700_v50, 1  ;;  %v512_v41 = vpop.f32.mrf.mxu1  ;;  %1385 = vmatprep.subr.bf16.mxu0 %v2554_v17 }
 0x103   : > { %v603_v8 = vpop.f32.mrf.mxu0  ;;  %v699_v9 = vrot.slane %v697_v52, 7  ;;  %v774_v10 = vor.u32 %v773_v54, %v704_v53  ;;  %v521_v48 = vadd.f32 %v2442_v24, %v2762_v63  ;;  %v2882_v63 = vld [vmem:[%s3314_s3 + $0xd0] sm:$0xff]  }
 0x104   : > { %v677_v14 = vmax.f32 %v661_v58, 0.0  ;;  %816 = vrot.lane.b32.xlu0 %v2789_v36, %s2555_s15  ;;  %v772_v15 = vor.u32 %v771_v0, %v697_v52  ;;  %v642_v56 = vadd.f32 %v603_v8, %v494_v3  ;;  %v2827_v19 = vpack.c.bf16 %v679_v55, %v678_v5 }
 0x105   : > { %v2456_v6 = vpop.f32.mrf.mxu0  ;;  %v2829_v20 = vor.u32 %v700_v50, %v699_v9  ;;  %v2833_v57 = vsel %vm2810_vm5, %v774_v10, 0  ;;  %v666_v21 = vadd.f32 %v2771_v7, %v644_v61  ;;  %v513_v61 = vadd.f32 %v512_v41, %v2764_v1  ;;  %1386 = vmatpush1.bf16.msra.mxu0 %v2882_v63 }
 0x106   : > { %v645_v22 = vadd.f32 %v2456_v6, %v505_v12  ;;  %v798_v23 = vsel %vm2810_vm5, %v772_v15, 0  ;;  %v2842_v26 = vpack.c.bf16 %v677_v14, %v676_v13  ;;  %v721_v27 = vshll.u32 %v2827_v19, 16  ;;  %1387 = vmatprep.subr.bf16.mxu0 %v2554_v17 }
 0x107   : > { %v606_v25 = vpop.f32.mrf.mxu0  ;;  %2210 = vmatprep.mubr.msk.bf16.mxu1 %vm830_vm4, %v798_v23  ;;  %2230 = vmatprep.mubr.msk.bf16.mxu0 %vm830_vm4, %v798_v23  ;;  %v664_v31 = vadd.f32 %v2771_v7, %v642_v56  ;;  %v718_v35 = vshrl.u32 %v2827_v19, 16  ;;  %v682_v37 = vmax.f32 %v666_v21, 0.0 }
 0x108   : > { %v667_v29 = vadd.f32 %v2771_v7, %v645_v22  ;;  %v643_v30 = vadd.f32 %v606_v25, %v497_v16  ;;  %818 = vrot.lane.b32.xlu1 %v2842_v26, %s2555_s15  ;;  %v714_v33 = vshll.u32 %v2842_v26, 16  ;;  %v777_v60 = vrot.slane %v721_v27, 1 }
 0x109   : > { %v2459_v34 = vpop.f32.mrf.mxu0  ;;  %v711_v43 = vshrl.u32 %v2842_v26, 16  ;;  %v680_v52 = vmax.f32 %v664_v31, 0.0 }
 0x10a   : > { %v683_v62 = vmax.f32 %v667_v29, 0.0  ;;  %v665_v38 = vadd.f32 %v2771_v7, %v643_v30  ;;  %v648_v39 = vadd.f32 %v2459_v34, %v518_v59  ;;  %v775_v44 = vrot.slane %v714_v33, 1  ;;  %v2934_v34 = vld [vmem:[%s3314_s3 + $0xc0] sm:$0xff]  }
 0x10b   : > { %v619_v42 = vpop.f32.mrf.mxu0  ;;  %v778_v47 = vor.u32 %v777_v60, %v718_v35 }
 0x10c   : > { %v681_v49 = vmax.f32 %v665_v38, 0.0  ;;  %v646_v50 = vadd.f32 %v619_v42, %v510_v28  ;;  %v2868_v51 = vpack.c.bf16 %v683_v62, %v682_v37  ;;  %820 = vrot.lane.b32.xlu1 %v2827_v19, %s2555_s15  ;;  %v776_v55 = vor.u32 %v775_v44, %v711_v43  ;;  %v2917_v28 = vld [vmem:[%s3314_s3 + $0xc8] sm:$0xff]  }
 0x10d   : > { %v2460_v54 = vpop.f32.mrf.mxu0  ;;  %v2877_v58 = vsel %vm2810_vm5, %v778_v47, 0  ;;  %v670_v0 = vadd.f32 %v2771_v7, %v648_v39  ;;  %1388 = vmatpush1.bf16.msra.mxu0 %v2917_v28  ;;  %v2959_v47 = vld [vmem:[%s3314_s3 + $0x118] sm:$0xff]  }
 0x10e   : > { %v649_v3 = vadd.f32 %v2460_v54, %v521_v48  ;;  %v735_v4 = vshll.u32 %v2868_v51, 16  ;;  %v668_v5 = vadd.f32 %v2771_v7, %v646_v50  ;;  %v2889_v9 = vpack.c.bf16 %v681_v49, %v680_v52  ;;  %1389 = vmatprep.subr.bf16.mxu0 %v2554_v17  ;;  %v2973_v50 = vld [vmem:[%s3314_s3 + $0x110] sm:$0xff]   ;;  %v2981_v52 = vld [vmem:[%s3314_s3 + $0x108] sm:$0xff]  }
 0x10f   : > { %v622_v8 = vpop.f32.mrf.mxu0  ;;  %v2893_v10 = vsel %vm2810_vm5, %v776_v55, 0  ;;  %v732_v1 = vshrl.u32 %v2868_v51, 16  ;;  %v686_v56 = vmax.f32 %v670_v0, 0.0 }
 0x110   : > { %v671_v12 = vadd.f32 %v2771_v7, %v649_v3  ;;  %v647_v13 = vadd.f32 %v622_v8, %v513_v61  ;;  %v781_v14 = vrot.slane %v735_v4, 1  ;;  %824 = vrot.lane.b32.xlu1 %v2868_v51, %s2555_s15  ;;  %v728_v15 = vshll.u32 %v2889_v9, 16  ;;  %822 = vrot.lane.b32.xlu0 %v2889_v9, %s2555_s15 }
 0x111   : > { %v725_v22 = vshrl.u32 %v2889_v9, 16  ;;  %v684_v24 = vmax.f32 %v668_v5, 0.0  ;;  %1390 = vmatpush1.bf16.msra.mxu0 %v2934_v34  ;;  %v763_v8 = vsel %vm2995_vm8, 0, %v2829_v20 }
 0x112   : > { %v687_v6 = vmax.f32 %v671_v12, 0.0  ;;  %v669_v16 = vadd.f32 %v2771_v7, %v647_v13  ;;  %v782_v21 = vor.u32 %v781_v14, %v732_v1  ;;  %v779_v23 = vrot.slane %v728_v15, 1  ;;  %1399 = vmatprep.subr.bf16.mxu0 %v2554_v17 }
 0x113   : > { %v706_v12 = vrot.slane %v704_v53, 7 }
 0x114   : > { %v685_v25 = vmax.f32 %v669_v16, 0.0  ;;  %v2912_v59 = vpack.c.bf16 %v687_v6, %v686_v56  ;;  %v2921_v7 = vsel %vm2810_vm5, %v782_v21, 0  ;;  %v780_v29 = vor.u32 %v779_v23, %v725_v22 }
 0x115   : > { %1400 = vmatpush2.bf16.msra.mxu0 %v2959_v47  ;;  %v709_v20 = vor.u32 %v707_v45, %v706_v12 }
 0x116   : > { %v749_v30 = vshll.u32 %v2912_v59, 16  ;;  %828 = vrot.lane.b32.xlu1 %v2912_v59, %s2555_s15  ;;  %v2928_v31 = vpack.c.bf16 %v685_v25, %v684_v24  ;;  %v2938_v60 = vsel %vm2810_vm5, %v780_v29, 0  ;;  %v746_v62 = vshrl.u32 %v2912_v59, 16  ;;  %1401 = vmatprep.subr.bf16.mxu0 %v2554_v17 }
 0x117   : > { %v764_v53 = vsel %vm2995_vm8, 0, %v709_v20 }
 0x118   : > { %v742_v37 = vshll.u32 %v2928_v31, 16  ;;  %826 = vrot.lane.b32.xlu0 %v2928_v31, %s2555_s15  ;;  %v785_v38 = vrot.slane %v749_v30, 1  ;;  %v739_v39 = vshrl.u32 %v2928_v31, 16  ;;  %v748_v24 = vrot.slane %v746_v62, 7  ;;  %s3237_s15 = scalar_lea.vmem %s3316_s5, %s2347_s13 }
 0x119   : > { %1402 = vmatpush2.bf16.msra.mxu0 %v2973_v50 }
 0x11a   : > { %v783_v41 = vrot.slane %v742_v37, 1  ;;  %v786_v42 = vor.u32 %v785_v38, %v746_v62  ;;  %1403 = vmatprep.subr.bf16.mxu0 %v2554_v17  ;;  %v741_v21 = vrot.slane %v739_v39, 7 }
 0x11c   : > { %v784_v44 = vor.u32 %v783_v41, %v739_v39  ;;  %v2963_v48 = vsel %vm2810_vm5, %v786_v42, 0  ;;  %v744_v51 = vor.u32 %v742_v37, %v741_v21 }
 0x11d   : > { %1404 = vmatpush2.bf16.msra.mxu0 %v2981_v52 }
 0x11e   : > { %v2967_v49 = vsel %vm2810_vm5, %v784_v44, 0  ;;  %1405 = vmatprep.subr.bf16.mxu0 %v2554_v17  ;;  %v769_v23 = vsel %vm2995_vm8, 0, %v744_v51 }
 0x121   : > { %1406 = vmatpush2.bf16.msra.mxu0 %v2987_v2  ;;  %v2991_v54 = vpop.f32.mrf.mxu0 }
 0x123   : > { %v1217_v55 = vpop.f32.mrf.mxu0 }
 0x125   : > { %v2993_v61 = vpop.f32.mrf.mxu0 }
 0x127   : > { %v1220_v0 = vpop.f32.mrf.mxu0 }
 0x172   : > { %v815_v5 = vpop.permute.xlu0 %814 }
 0x173   : > { %v833_v13 = vsel %vm830_vm4, %v763_v8, %v815_v5 }
 0x174   : > { %1042 = vmatmul.mubr.bf16.vlgmr.msra.gmra.mxu1 %v833_v13  ;;  %1222 = vmatmul.mubr.bf16.gmra.mxu0 %v833_v13 }
 0x175   : > { %2473 = vmatpush1.bf16.msra.mxu1 %v2776_v11  ;;  %2211 = vmatprep.mubr.msk.bf16.mxu1 %vm830_vm4, %v2833_v57  ;;  %v713_v11 = vrot.slane %v711_v43, 7  ;;  %v720_v43 = vrot.slane %v718_v35, 7 }
 0x176   : > { %2231 = vmatprep.mubr.msk.bf16.mxu0 %vm830_vm4, %v2833_v57  ;;  %2462 = vmatprep.subr.bf16.mxu1 %v2554_v17  ;;  %v817_v14 = vpop.permute.xlu0 %816 }
 0x177   : > { %v3020_v56 = vsel %vm830_vm4, %v764_v53, %v817_v14 }
 0x179   : > { %2474 = vmatpush1.bf16.msra.mxu1 %v2787_v32  ;;  %v716_v32 = vor.u32 %v714_v33, %v713_v11  ;;  %v727_v33 = vrot.slane %v725_v22, 7 }
 0x17a   : > { %2463 = vmatprep.subr.bf16.mxu1 %v2554_v17  ;;  %v819_v36 = vpop.permute.xlu1 %818 }
 0x17b   : > { %v765_v45 = vsel %vm2995_vm8, 0, %v716_v32  ;;  %v730_v19 = vor.u32 %v728_v15, %v727_v33 }
 0x17c   : > { %1050 = vmatmul.mubr.bf16.gmra.mxu1 %v3020_v56  ;;  %1230 = vmatmul.mubr.bf16.gmra.mxu0 %v3020_v56  ;;  %v3038_v6 = vsel %vm830_vm4, %v765_v45, %v819_v36 }
 0x17d   : > { %2212 = vmatprep.mubr.msk.bf16.mxu1 %vm830_vm4, %v2893_v10  ;;  %2232 = vmatprep.mubr.msk.bf16.mxu0 %vm830_vm4, %v2893_v10 }
 0x17e   : > { %2475 = vmatpush1.bf16.msra.mxu1 %v2798_v46  ;;  %v723_v46 = vor.u32 %v721_v27, %v720_v43 }
 0x17f   : > { %2464 = vmatprep.subr.bf16.mxu1 %v2554_v17 }
 0x180   : > { %v766_v26 = vsel %vm2995_vm8, 0, %v723_v46 }
 0x182   : > { %2476 = vmatpush1.bf16.msra.mxu1 %v2825_v18  ;;  %v821_v18 = vpop.permute.xlu1 %820  ;;  %v823_v27 = vpop.permute.xlu0 %822 }
 0x183   : > { %2465 = vmatprep.subr.bf16.mxu1 %v2554_v17  ;;  %v845_v35 = vsel %vm830_vm4, %v766_v26, %v821_v18 }
 0x184   : > { %1058 = vmatmul.mubr.bf16.gmra.mxu1 %v3038_v6  ;;  %1238 = vmatmul.mubr.bf16.gmra.mxu0 %v3038_v6 }
 0x185   : > { %2213 = vmatprep.mubr.msk.bf16.mxu1 %vm830_vm4, %v2877_v58  ;;  %2233 = vmatprep.mubr.msk.bf16.mxu0 %vm830_vm4, %v2877_v58 }
 0x186   : > { %2477 = vmatpush1.bf16.msra.mxu1 %v2860_v40  ;;  %v767_v40 = vsel %vm2995_vm8, 0, %v730_v19 }
 0x187   : > { %2466 = vmatprep.subr.bf16.mxu1 %v2554_v17  ;;  %v849_v16 = vsel %vm830_vm4, %v767_v40, %v823_v27 }
 0x18a   : > { %2478 = vmatpush1.bf16.msra.mxu1 %v2882_v63  ;;  %v734_v63 = vrot.slane %v732_v1, 7  ;;  %v825_v1 = vpop.permute.xlu1 %824 }
 0x18b   : > { %2467 = vmatprep.subr.bf16.mxu1 %v2554_v17 }
 0x18c   : > { %1066 = vmatmul.mubr.bf16.gmra.mxu1 %v845_v35  ;;  %1246 = vmatmul.mubr.bf16.gmra.mxu0 %v845_v35  ;;  %v737_v9 = vor.u32 %v735_v4, %v734_v63  ;;  %v827_v4 = vpop.permute.xlu0 %826 }
 0x18d   : > { %2214 = vmatprep.mubr.msk.bf16.mxu1 %vm830_vm4, %v2938_v60  ;;  %2234 = vmatprep.mubr.msk.bf16.mxu0 %vm830_vm4, %v2938_v60  ;;  %v857_v25 = vsel %vm830_vm4, %v769_v23, %v827_v4 }
 0x18e   : > { %2479 = vmatpush1.bf16.msra.mxu1 %v2917_v28  ;;  %v768_v15 = vsel %vm2995_vm8, 0, %v737_v9  ;;  %v751_v28 = vor.u32 %v749_v30, %v748_v24  ;;  %v829_v29 = vpop.permute.xlu1 %828 }
 0x18f   : > { %2468 = vmatprep.subr.bf16.mxu1 %v2554_v17  ;;  %v853_v22 = vsel %vm830_vm4, %v768_v15, %v825_v1 }
 0x190   : > { %v770_v31 = vsel %vm2995_vm8, 0, %v751_v28 }
 0x192   : > { %2480 = vmatpush1.bf16.msra.mxu1 %v2934_v34  ;;  %v861_v34 = vsel %vm830_vm4, %v770_v31, %v829_v29 }
 0x193   : > { %2469 = vmatprep.subr.bf16.mxu1 %v2554_v17 }
 0x194   : > { %1074 = vmatmul.mubr.bf16.gmra.mxu1 %v849_v16  ;;  %1254 = vmatmul.mubr.bf16.gmra.mxu0 %v849_v16 }
 0x195   : > { %2215 = vmatprep.mubr.msk.bf16.mxu1 %vm830_vm4, %v2921_v7  ;;  %2235 = vmatprep.mubr.msk.bf16.mxu0 %vm830_vm4, %v2921_v7 }
 0x196   : > { %2481 = vmatpush2.bf16.msra.mxu1 %v2959_v47 }
 0x197   : > { %2470 = vmatprep.subr.bf16.mxu1 %v2554_v17 }
 0x19a   : > { %2482 = vmatpush2.bf16.msra.mxu1 %v2973_v50 }
 0x19b   : > { %2471 = vmatprep.subr.bf16.mxu1 %v2554_v17 }
 0x19c   : > { %1082 = vmatmul.mubr.bf16.gmra.mxu1 %v853_v22  ;;  %1262 = vmatmul.mubr.bf16.gmra.mxu0 %v853_v22 }
 0x19d   : > { %2216 = vmatprep.mubr.msk.bf16.mxu1 %vm830_vm4, %v2967_v49  ;;  %2236 = vmatprep.mubr.msk.bf16.mxu0 %vm830_vm4, %v2967_v49 }
 0x19e   : > { %2483 = vmatpush2.bf16.msra.mxu1 %v2981_v52 }
 0x19f   : > { %2472 = vmatprep.subr.bf16.mxu1 %v2554_v17 }
 0x1a2   : > { %2484 = vmatpush2.bf16.msra.mxu1 %v2987_v2 }
 0x1a4   : > { %1090 = vmatmul.mubr.bf16.gmra.mxu1 %v857_v25  ;;  %1270 = vmatmul.mubr.bf16.gmra.mxu0 %v857_v25 }
 0x1a5   : > { %2217 = vmatprep.mubr.msk.bf16.mxu1 %vm830_vm4, %v2963_v48  ;;  %2273 = vmatprep.mubr.msk.bf16.mxu0 %vm830_vm4, %v2833_v57 }
 0x1ac   : > { %1098 = vmatmul.mubr.bf16.gmra.mxu1 %v861_v34  ;;  %1408 = vmatmul.mubr.bf16.vlgmr.msra.gmra.mxu0 %v3020_v56 }
 0x1ad   : > { %2274 = vmatprep.mubr.msk.bf16.mxu0 %vm830_vm4, %v2893_v10  ;;  %2275 = vmatprep.mubr.msk.bf16.mxu1 %vm830_vm4, %v2877_v58 }
 0x1b4   : > { %1416 = vmatmul.mubr.bf16.gmra.mxu0 %v3038_v6  ;;  %1424 = vmatmul.mubr.bf16.vlgmr.msra.gmra.mxu1 %v845_v35 }
 0x1b5   : > { %2276 = vmatprep.mubr.msk.bf16.mxu1 %vm830_vm4, %v2938_v60 }
 0x1bc   : > { %1432 = vmatmul.mubr.bf16.gmra.mxu1 %v849_v16 }
 0x1bd   : > { %2277 = vmatprep.mubr.msk.bf16.mxu1 %vm830_vm4, %v2921_v7 }
 0x1c4   : > { %1440 = vmatmul.mubr.bf16.gmra.mxu1 %v853_v22 }
 0x1c5   : > { %2278 = vmatprep.mubr.msk.bf16.mxu1 %vm830_vm4, %v2967_v49 }
 0x1cc   : > { %1448 = vmatmul.mubr.bf16.gmra.mxu1 %v857_v25 }
 0x1cd   : > { %2279 = vmatprep.mubr.msk.bf16.mxu1 %vm830_vm4, %v2963_v48 }
 0x1d4   : > { %1456 = vmatmul.mubr.bf16.gmra.mxu1 %v861_v34 }
 0x1d5   : > { %1463 = vmatprep.mubr.bf16.mxu1 %v2554_v17 }
 0x1dc   : > { %1464 = vmatmul.mubr.bf16.gmra.mxu1 %v2554_v17 }
 0x234   : > { %v3127_v57 = vpop.f32.mrf.mxu1  ;;  %v3129_v58 = vpop.f32.mrf.mxu0 }
 0x236   : > { %v1045_v10 = vpop.f32.mrf.mxu1  ;;  %v1225_v59 = vpop.f32.mrf.mxu0 }
 0x238   : > { %v3131_v7 = vpop.f32.mrf.mxu1  ;;  %v3133_v30 = vpop.f32.mrf.mxu0 }
 0x23a   : > { %v1048_v60 = vpop.f32.mrf.mxu1  ;;  %v1228_v37 = vpop.f32.mrf.mxu0 }
 0x23b   : > { %v1216_v60 = vadd.f32 %v2991_v54, %v3127_v57 }
 0x23c   : > { %v3135_v62 = vpop.f32.mrf.mxu1  ;;  %v1231_v38 = vpop.f32.mrf.mxu0 }
 0x23d   : > { %v1224_v54 = vadd.f32 %v3129_v58, %v3135_v62 }
 0x23e   : > { %v1053_v39 = vpop.f32.mrf.mxu1  ;;  %v1233_v41 = vpop.f32.mrf.mxu0 }
 0x240   : > { %v3137_v42 = vpop.f32.mrf.mxu1  ;;  %v1234_v17 = vpop.f32.mrf.mxu0 }
 0x242   : > { %v1056_v44 = vpop.f32.mrf.mxu1  ;;  %v1236_v47 = vpop.f32.mrf.mxu0 }
 0x243   : > { %v2556_v44 = vmov 1983009808  }
 0x244   : > { %v1059_v48 = vpop.f32.mrf.mxu1  ;;  %v3139_v49 = vpop.f32.mrf.mxu0  ;;  %v1544_v47 = vunpack.c.l.s4 %v2556_v44 }
 0x245   : > { %v3141_v50 = vadd.f32 %v1231_v38, %v1059_v48  ;;  %v1546_v48 = vlaneseq }
 0x246   : > { %v1061_v52 = vpop.f32.mrf.mxu1  ;;  %v1241_v2 = vpop.f32.mrf.mxu0 }
 0x247   : > { %v3178_v52 = vld [vmem:[%s3315_s4] ss:$0 sm:$0xff] }
 0x248   : > { %v1062_v55 = vpop.f32.mrf.mxu1  ;;  %v3143_v0 = vpop.f32.mrf.mxu0 }
 0x249   : > { %v3145_v3 = vadd.f32 %v1234_v17, %v1062_v55 }
 0x24a   : > { %v1064_v5 = vpop.f32.mrf.mxu1  ;;  %v1244_v8 = vpop.f32.mrf.mxu0 }
 0x24b   : > { %v1219_v5 = vadd.f32 %v2993_v61, %v3131_v7 }
 0x24c   : > { %v3147_v12 = vpop.f32.mrf.mxu1  ;;  %v1247_v13 = vpop.f32.mrf.mxu0 }
 0x24e   : > { %v1069_v20 = vpop.f32.mrf.mxu1  ;;  %v1249_v14 = vpop.f32.mrf.mxu0 }
 0x24f   : > { %v1547_v20 = vshrl.u32 %v1546_v48, 7 }
 0x250   : > { %v3149_v53 = vpop.f32.mrf.mxu1  ;;  %v1250_v11 = vpop.f32.mrf.mxu0 }
 0x252   : > { %v1072_v56 = vpop.f32.mrf.mxu1  ;;  %v1252_v32 = vpop.f32.mrf.mxu0 }
 0x254   : > { %v1075_v36 = vpop.f32.mrf.mxu1  ;;  %v3151_v45 = vpop.f32.mrf.mxu0 }
 0x255   : > { %v3153_v43 = vadd.f32 %v1247_v13, %v1075_v36  ;;  %v1545_v13 = vunpack.c.0.s8 %v1544_v47 }
 0x256   : > { %v1077_v6 = vpop.f32.mrf.mxu1  ;;  %v1257_v46 = vpop.f32.mrf.mxu0 }
 0x257   : > { %v1227_v6 = vadd.f32 %v3133_v30, %v3137_v42  ;;  %v3188_v61 = vsub.s32 %v1545_v13, %v1547_v20  ;;  %v1240_v42 = vadd.f32 %v3139_v49, %v3147_v12 }
 0x258   : > { %v1078_v18 = vpop.f32.mrf.mxu1  ;;  %v3155_v26 = vpop.f32.mrf.mxu0 }
 0x259   : > { %v3157_v33 = vadd.f32 %v1250_v11, %v1078_v18 }
 0x25a   : > { %v1080_v35 = vpop.f32.mrf.mxu1  ;;  %v1260_v19 = vpop.f32.mrf.mxu0 }
 0x25c   : > { %v3159_v27 = vpop.f32.mrf.mxu1  ;;  %v1263_v40 = vpop.f32.mrf.mxu0 }
 0x25e   : > { %v1085_v63 = vpop.f32.mrf.mxu1  ;;  %v1265_v16 = vpop.f32.mrf.mxu0 }
 0x260   : > { %v3161_v9 = vpop.f32.mrf.mxu1  ;;  %v1266_v1 = vpop.f32.mrf.mxu0 }
 0x261   : > { %v3209_v49 = vadd.f32 %v3155_v26, %v3161_v9 }
 0x262   : > { %v1088_v15 = vpop.f32.mrf.mxu1  ;;  %v1268_v21 = vpop.f32.mrf.mxu0 }
 0x264   : > { %v1091_v22 = vpop.f32.mrf.mxu1  ;;  %v3163_v51 = vpop.f32.mrf.mxu0 }
 0x265   : > { %v3165_v4 = vadd.f32 %v1263_v40, %v1091_v22 }
 0x266   : > { %v1093_v23 = vpop.f32.mrf.mxu1  ;;  %v1273_v24 = vpop.f32.mrf.mxu0 }
 0x268   : > { %v1094_v25 = vpop.f32.mrf.mxu1  ;;  %v3167_v28 = vpop.f32.mrf.mxu0 }
 0x269   : > { %v3169_v29 = vadd.f32 %v1266_v1, %v1094_v25 }
 0x26a   : > { %v1096_v31 = vpop.f32.mrf.mxu1  ;;  %v1276_v34 = vpop.f32.mrf.mxu0 }
 0x26b   : > { %v3205_v34 = vadd.f32 %v3151_v45, %v3159_v27 }
 0x26c   : > { %v1099_v10 = vpop.f32.mrf.mxu1  ;;  %v1409_v59 = vpop.f32.mrf.mxu0 }
 0x26d   : > { %v1472_v39 = vadd.f32 %v1409_v59, %v1216_v60 }
 0x26e   : > { %v1101_v37 = vpop.f32.mrf.mxu1  ;;  %v1411_v38 = vpop.f32.mrf.mxu0 }
 0x26f   : > { %v1494_v57 = vadd.f32 %v3178_v52, %v1472_v39 }
 0x270   : > { %v3173_v41 = vpop.f32.mrf.mxu1  ;;  %v1412_v17 = vpop.f32.mrf.mxu0 }
 0x271   : > { %v1473_v11 = vadd.f32 %v1412_v17, %v1219_v5  ;;  %v1510_v18 = vmax.f32 %v1494_v57, 0.0  ;;  %v3213_v17 = vadd.f32 %v3163_v51, %v1099_v10 }
 0x272   : > { %v1104_v2 = vpop.f32.mrf.mxu1  ;;  %v1414_v55 = vpop.f32.mrf.mxu0 }
 0x273   : > { %v1495_v35 = vadd.f32 %v3178_v52, %v1473_v11 }
 0x274   : > { %v1417_v8 = vpop.f32.mrf.mxu0  ;;  %v1425_v14 = vpop.f32.mrf.mxu1 }
 0x275   : > { %v1474_v56 = vadd.f32 %v1417_v8, %v1224_v54  ;;  %v1476_v58 = vadd.f32 %v1425_v14, %v3141_v50  ;;  %v1511_v23 = vmax.f32 %v1495_v35, 0.0 }
 0x276   : > { %v1419_v32 = vpop.f32.mrf.mxu0  ;;  %v1427_v36 = vpop.f32.mrf.mxu1 }
 0x277   : > { %v1496_v46 = vadd.f32 %v3178_v52, %v1474_v56  ;;  %v1498_v21 = vadd.f32 %v3178_v52, %v1476_v58 }
 0x278   : > { %v1420_v7 = vpop.f32.mrf.mxu0  ;;  %v1428_v62 = vpop.f32.mrf.mxu1 }
 0x279   : > { %v1512_v19 = vmax.f32 %v1496_v46, 0.0  ;;  %v1475_v40 = vadd.f32 %v1420_v7, %v1227_v6  ;;  %v1477_v63 = vadd.f32 %v1428_v62, %v3145_v3  ;;  %v1243_v3 = vadd.f32 %v3143_v0, %v3149_v53 }
 0x27a   : > { %v1422_v16 = vpop.f32.mrf.mxu0  ;;  %v1430_v1 = vpop.f32.mrf.mxu1  ;;  %v1514_v0 = vmax.f32 %v1498_v21, 0.0 }
 0x27b   : > { %v1526_v15 = vmax.f32 %v1510_v18, %v1512_v19  ;;  %v1497_v30 = vadd.f32 %v3178_v52, %v1475_v40  ;;  %v3198_v50 = vadd.f32 %v3178_v52, %v1477_v63 }
 0x27c   : > { %v1433_v22 = vpop.f32.mrf.mxu1 }
 0x27d   : > { %v1542_v24 = vcombine.high %v1526_v15, %v1526_v15  ;;  %v1549_v25 = vrot.slane %v1526_v15, %v3188_v61  ;;  %v1513_v31 = vmax.f32 %v1497_v30, 0.0  ;;  %v1478_v12 = vadd.f32 %v1433_v22, %v1240_v42 }
 0x27e   : > { %v1435_v59 = vpop.f32.mrf.mxu1  ;;  %v1515_v53 = vmax.f32 %v3198_v50, 0.0 }
 0x27f   : > { %v1556_v60 = vrot.slane %v1542_v24, %v3188_v61  ;;  %v1557_v37 = vcombine.high %v1549_v25, %v1549_v25  ;;  %v2281_v38 = vrot.slane %v1549_v25, 9  ;;  %v1527_v39 = vmax.f32 %v1511_v23, %v1513_v31 }
 0x280   : > { %v1500_v45 = vadd.f32 %v3178_v52, %v1478_v12  ;;  %v1436_v27 = vpop.f32.mrf.mxu1 }
 0x281   : > { %v1558_v44 = vcombine.high %v1556_v60, %v1556_v60  ;;  %v2282_v26 = vrot.slane %v1557_v37, 9  ;;  %v2283_v9 = vrot.slane %v1556_v60, 9  ;;  %v1806_v47 = vmax.f32 %v1549_v25, %v2281_v38 }
 0x282   : > { %v1559_v48 = vcombine.high %v1527_v39, %v1527_v39  ;;  %v1566_v2 = vrot.slane %v1527_v39, %v3188_v61  ;;  %v1516_v55 = vmax.f32 %v1500_v45, 0.0  ;;  %v3218_v5 = vadd.f32 %v1436_v27, %v1243_v3  ;;  %v1438_v51 = vpop.f32.mrf.mxu1 }
 0x283   : > { %v2284_v10 = vrot.slane %v1558_v44, 9  ;;  %v1807_v54 = vmax.f32 %v1557_v37, %v2282_v26  ;;  %v1808_v57 = vmax.f32 %v1556_v60, %v2283_v9  ;;  %v2348_v8 = vpack.c.bf16 %v1806_v47, %v1806_v47 }
 0x284   : > { %v1573_v13 = vrot.slane %v1559_v48, %v3188_v61  ;;  %v1574_v20 = vcombine.high %v1566_v2, %v1566_v2  ;;  %v2285_v14 = vrot.slane %v1566_v2, 9  ;;  %v1528_v11 = vmax.f32 %v1514_v0, %v1516_v55  ;;  %v3221_v56 = vpop.f32.mrf.mxu1 }
 0x285   : > { %v1809_v32 = vmax.f32 %v1558_v44, %v2284_v10  ;;  %v2349_v36 = vpack.c.bf16 %v1807_v54, %v1807_v54  ;;  %v2350_v6 = vpack.c.bf16 %v1808_v57, %v1808_v57  ;;  %v1966_v46 = vunpack.c.l.b16 %v2348_v8 }
 0x286   : > { %v1575_v18 = vcombine.high %v1573_v13, %v1573_v13  ;;  %v2286_v58 = vrot.slane %v1574_v20, 9  ;;  %v2287_v7 = vrot.slane %v1573_v13, 9  ;;  %v1810_v62 = vmax.f32 %v1566_v2, %v2285_v14  ;;  %v1443_v35 = vpop.f32.mrf.mxu1 }
 0x287   : > { %v2351_v19 = vpack.c.bf16 %v1809_v32, %v1809_v32  ;;  %v1967_v40 = vunpack.c.l.b16 %v2349_v36  ;;  %v1968_v63 = vunpack.c.l.b16 %v2350_v6  ;;  %v1576_v16 = vcombine.high %v1528_v11, %v1528_v11 }
 0x288   : > { %v2288_v1 = vrot.slane %v1575_v18, 9  ;;  %v1811_v15 = vmax.f32 %v1574_v20, %v2286_v58  ;;  %v1812_v30 = vmax.f32 %v1573_v13, %v2287_v7  ;;  %v2352_v42 = vpack.c.bf16 %v1810_v62, %v1810_v62  ;;  %v1444_v21 = vpop.f32.mrf.mxu1 }
 0x289   : > { %v1969_v22 = vunpack.c.l.b16 %v2351_v19  ;;  %v1998_v23 = vrot.slane %v1967_v40, 7  ;;  %v2001_v24 = vrot.slane %v1968_v63, 6  ;;  %v1583_v25 = vrot.slane %v1528_v11, %v3188_v61 }
 0x28a   : > { %v1813_v31 = vmax.f32 %v1575_v18, %v2288_v1  ;;  %v2353_v3 = vpack.c.bf16 %v1811_v15, %v1811_v15  ;;  %v2354_v12 = vpack.c.bf16 %v1812_v30, %v1812_v30  ;;  %v1970_v59 = vunpack.c.l.b16 %v2352_v42  ;;  %v1446_v60 = vpop.f32.mrf.mxu1 }
 0x28b   : > { %v2000_v37 = vsel %vm1999_vm9, %v1998_v23, %v1966_v46  ;;  %v2004_v38 = vrot.slane %v1969_v22, 5  ;;  %v1590_v39 = vrot.slane %v1576_v16, %v3188_v61  ;;  %v1591_v0 = vcombine.high %v1583_v25, %v1583_v25 }
 0x28c   : > { %v2003_v45 = vsel %vm2002_vm10, %v2001_v24, %v2000_v37  ;;  %v2355_v27 = vpack.c.bf16 %v1813_v31, %v1813_v31  ;;  %v1971_v44 = vunpack.c.l.b16 %v2353_v3  ;;  %v1972_v26 = vunpack.c.l.b16 %v2354_v12  ;;  %v1449_v9 = vpop.f32.mrf.mxu1 }
 0x28d   : > { %v2006_v47 = vsel %vm2005_vm11, %v2004_v38, %v2003_v45  ;;  %v2007_v48 = vrot.slane %v1970_v59, 4  ;;  %v1592_v2 = vcombine.high %v1590_v39, %v1590_v39  ;;  %v2289_v55 = vrot.slane %v1583_v25, 9 }
 0x28e   : > { %v1973_v51 = vunpack.c.l.b16 %v2355_v27  ;;  %v2010_v10 = vrot.slane %v1971_v44, 3  ;;  %v2013_v54 = vrot.slane %v1972_v26, 2  ;;  %v2290_v57 = vrot.slane %v1591_v0, 9  ;;  %v1451_v8 = vpop.f32.mrf.mxu1 }
 0x28f   : > { %v2009_v13 = vsel %vm2008_vm12, %v2007_v48, %v2006_v47  ;;  %v2291_v20 = vrot.slane %v1590_v39, 9  ;;  %v2292_v14 = vrot.slane %v1592_v2, 9  ;;  %v1814_v11 = vmax.f32 %v1583_v25, %v2289_v55 }
 0x290   : > { %v2012_v32 = vsel %vm2011_vm13, %v2010_v10, %v2009_v13  ;;  %v2016_v36 = vrot.slane %v1973_v51, 1  ;;  %v1815_v6 = vmax.f32 %v1591_v0, %v2290_v57  ;;  %v1501_v46 = vadd.f32 %v3178_v52, %v3218_v5  ;;  %v1452_v18 = vpop.f32.mrf.mxu1 }
 0x291   : > { %v2015_v58 = vsel %vm2014_vm14, %v2013_v54, %v2012_v32  ;;  %v1816_v7 = vmax.f32 %v1590_v39, %v2291_v20  ;;  %v1817_v62 = vmax.f32 %v1592_v2, %v2292_v14  ;;  %v2356_v35 = vpack.c.bf16 %v1814_v11, %v1814_v11 }
 0x292   : > { %v2018_v19 = vsel %vm2017_vm15, %v2016_v36, %v2015_v58  ;;  %v2357_v40 = vpack.c.bf16 %v1815_v6, %v1815_v6  ;;  %v1517_v63 = vmax.f32 %v1501_v46, 0.0  ;;  %v1480_v16 = vadd.f32 %v3221_v56, %v3153_v43  ;;  %v1454_v5 = vpop.f32.mrf.mxu1 }
 0x293   : > { %v3244_v1 = vadd.f32 %v3167_v28, %v3173_v41  ;;  %v2061_v15 = vpack.c.b16 %v2018_v19, %v2018_v19  ;;  %v2358_v30 = vpack.c.bf16 %v1816_v7, %v1816_v7  ;;  %v2359_v42 = vpack.c.bf16 %v1817_v62, %v1817_v62 }
 0x294   : > { %v1975_v22 = vunpack.c.l.b16 %v2357_v40  ;;  %v1529_v23 = vmax.f32 %v1515_v53, %v1517_v63  ;;  %v1502_v24 = vadd.f32 %v3178_v52, %v1480_v16  ;;  %v1481_v25 = vadd.f32 %v1444_v21, %v3157_v33  ;;  %v1457_v31 = vpop.f32.mrf.mxu1 }
 0x295   : > { %2070 = vst.msk [vmem:[%s3237_s15] sm:$0xf] %vm2069_vm0, %v2061_v15  ;;  %v1976_v43 = vunpack.c.l.b16 %v2358_v30  ;;  %v1977_v56 = vunpack.c.l.b16 %v2359_v42  ;;  %v1482_v3 = vadd.f32 %v1449_v9, %v3205_v34  ;;  %v1483_v28 = vadd.f32 %v1452_v18, %v3209_v49 }
 0x296   : > { %v1974_v41 = vunpack.c.l.b16 %v2356_v35  ;;  %v2019_v12 = vrot.slane %v1975_v22, 7  ;;  %v1593_v59 = vcombine.high %v1529_v23, %v1529_v23  ;;  %v1600_v60 = vrot.slane %v1529_v23, %v3188_v61  ;;  %v1459_v50 = vpop.f32.mrf.mxu1 }
 0x297   : > { %v2021_v53 = vrot.slane %v1976_v43, 6  ;;  %v2023_v37 = vrot.slane %v1977_v56, 5  ;;  %v1503_v38 = vadd.f32 %v3178_v52, %v1481_v25  ;;  %v1504_v33 = vadd.f32 %v3178_v52, %v1482_v3 }
 0x298   : > { %v2020_v21 = vsel %vm1999_vm9, %v2019_v12, %v1974_v41  ;;  %v1607_v39 = vrot.slane %v1593_v59, %v3188_v61  ;;  %v1608_v0 = vcombine.high %v1600_v60, %v1600_v60  ;;  %v2293_v34 = vrot.slane %v1600_v60, 9  ;;  %v3259_v45 = vpop.f32.mrf.mxu1 }
 0x299   : > { %v2022_v49 = vsel %vm2002_vm10, %v2021_v53, %v2020_v21  ;;  %v1518_v27 = vmax.f32 %v1502_v24, 0.0  ;;  %v1520_v44 = vmax.f32 %v1504_v33, 0.0  ;;  %v1505_v26 = vadd.f32 %v3178_v52, %v1483_v28 }
 0x29a   : > { %v1609_v9 = vcombine.high %v1607_v39, %v1607_v39  ;;  %v2294_v47 = vrot.slane %v1608_v0, 9  ;;  %v2295_v48 = vrot.slane %v1607_v39, 9  ;;  %v1818_v2 = vmax.f32 %v1600_v60, %v2293_v34  ;;  %v1462_v55 = vpop.f32.mrf.mxu1 }
 0x29b   : > { %v2024_v51 = vsel %vm2005_vm11, %v2023_v37, %v2022_v49  ;;  %v1519_v10 = vmax.f32 %v1503_v38, 0.0  ;;  %v1530_v54 = vmax.f32 %v1518_v27, %v1520_v44  ;;  %v1521_v57 = vmax.f32 %v1505_v26, 0.0 }
 0x29c   : > { %v2296_v8 = vrot.slane %v1609_v9, 9  ;;  %v1819_v13 = vmax.f32 %v1608_v0, %v2294_v47  ;;  %v1820_v20 = vmax.f32 %v1607_v39, %v2295_v48  ;;  %v2360_v14 = vpack.c.bf16 %v1818_v2, %v1818_v2  ;;  %v3264_v11 = vpop.f32.mrf.mxu1 }
 0x29d   : > { %v1610_v32 = vcombine.high %v1530_v54, %v1530_v54  ;;  %v1617_v36 = vrot.slane %v1530_v54, %v3188_v61  ;;  %v1531_v6 = vmax.f32 %v1519_v10, %v1521_v57  ;;  %v1484_v46 = vadd.f32 %v1457_v31, %v3165_v4 }
 0x29e   : > { %v1821_v18 = vmax.f32 %v1609_v9, %v2296_v8  ;;  %v2361_v58 = vpack.c.bf16 %v1819_v13, %v1819_v13  ;;  %v2362_v7 = vpack.c.bf16 %v1820_v20, %v1820_v20  ;;  %v1978_v62 = vunpack.c.l.b16 %v2360_v14  ;;  %v1467_v35 = vpop.f32.mrf.mxu1 }
 0x29f   : > { %v1624_v19 = vrot.slane %v1610_v32, %v3188_v61  ;;  %v1625_v40 = vcombine.high %v1617_v36, %v1617_v36  ;;  %v2297_v63 = vrot.slane %v1617_v36, 9  ;;  %v1627_v16 = vcombine.high %v1531_v6, %v1531_v6 }
 0x2a0   : > { %v2363_v5 = vpack.c.bf16 %v1821_v18, %v1821_v18  ;;  %v1979_v15 = vunpack.c.l.b16 %v2361_v58  ;;  %v1980_v30 = vunpack.c.l.b16 %v2362_v7  ;;  %v2025_v42 = vrot.slane %v1978_v62, 4  ;;  %v1468_v22 = vpop.f32.mrf.mxu1 }
 0x2a1   : > { %v1626_v23 = vcombine.high %v1624_v19, %v1624_v19  ;;  %v2298_v24 = vrot.slane %v1625_v40, 9  ;;  %v2299_v25 = vrot.slane %v1624_v19, 9  ;;  %v1822_v43 = vmax.f32 %v1617_v36, %v2297_v63 }
 0x2a2   : > { %v1981_v4 = vunpack.c.l.b16 %v2363_v5  ;;  %v2026_v31 = vsel %vm2008_vm12, %v2025_v42, %v2024_v51  ;;  %v2027_v56 = vrot.slane %v1979_v15, 3  ;;  %v2029_v3 = vrot.slane %v1980_v30, 2  ;;  %v1470_v28 = vpop.f32.mrf.mxu1 }
 0x2a3   : > { %v2300_v41 = vrot.slane %v1626_v23, 9  ;;  %v1823_v12 = vmax.f32 %v1625_v40, %v2298_v24  ;;  %v1824_v59 = vmax.f32 %v1624_v19, %v2299_v25  ;;  %v2364_v60 = vpack.c.bf16 %v1822_v43, %v1822_v43 }
 0x2a4   : > { %v2028_v50 = vsel %vm2011_vm13, %v2027_v56, %v2026_v31  ;;  %v2031_v53 = vrot.slane %v1981_v4, 1  ;;  %v1634_v37 = vrot.slane %v1531_v6, %v3188_v61  ;;  %v1641_v38 = vrot.slane %v1627_v16, %v3188_v61 }
 0x2a5   : > { %v2030_v33 = vsel %vm2014_vm14, %v2029_v3, %v2028_v50  ;;  %v1825_v21 = vmax.f32 %v1626_v23, %v2300_v41  ;;  %v2365_v39 = vpack.c.bf16 %v1823_v12, %v1823_v12  ;;  %v2366_v0 = vpack.c.bf16 %v1824_v59, %v1824_v59 }
 0x2a6   : > { %v2032_v34 = vsel %vm2017_vm15, %v2031_v53, %v2030_v33  ;;  %v1642_v49 = vcombine.high %v1634_v37, %v1634_v37  ;;  %v1643_v27 = vcombine.high %v1641_v38, %v1641_v38  ;;  %v1506_v44 = vadd.f32 %v3178_v52, %v1484_v46 }
 0x2a7   : > { %v2062_v26 = vpack.c.b16 %v2032_v34, %v2032_v34  ;;  %v2367_v9 = vpack.c.bf16 %v1825_v21, %v1825_v21  ;;  %v1983_v47 = vunpack.c.l.b16 %v2365_v39  ;;  %v1984_v48 = vunpack.c.l.b16 %v2366_v0 }
 0x2a8   : > { %v2301_v2 = vrot.slane %v1634_v37, 9  ;;  %v2302_v55 = vrot.slane %v1642_v49, 9  ;;  %v2303_v51 = vrot.slane %v1641_v38, 9  ;;  %v2304_v10 = vrot.slane %v1643_v27, 9 }
 0x2a9   : > { %2071 = vst.msk [vmem:[%s3237_s15 + $0x4] sm:$0xf] %vm2069_vm0, %v2062_v26  ;;  %v1982_v54 = vunpack.c.l.b16 %v2364_v60  ;;  %v1985_v57 = vunpack.c.l.b16 %v2367_v9  ;;  %v2033_v8 = vrot.slane %v1983_v47, 7  ;;  %v2035_v13 = vrot.slane %v1984_v48, 6 }
 0x2aa   : > { %v1826_v20 = vmax.f32 %v1634_v37, %v2301_v2  ;;  %v1827_v14 = vmax.f32 %v1642_v49, %v2302_v55  ;;  %v1828_v32 = vmax.f32 %v1641_v38, %v2303_v51  ;;  %v1829_v36 = vmax.f32 %v1643_v27, %v2304_v10 }
 0x2ab   : > { %v2034_v6 = vsel %vm1999_vm9, %v2033_v8, %v1982_v54  ;;  %v2037_v46 = vrot.slane %v1985_v57, 5  ;;  %v1485_v18 = vadd.f32 %v3259_v45, %v3169_v29  ;;  %v1486_v58 = vadd.f32 %v3264_v11, %v3213_v17 }
 0x2ac   : > { %v2036_v7 = vsel %vm2002_vm10, %v2035_v13, %v2034_v6  ;;  %v2368_v62 = vpack.c.bf16 %v1826_v20, %v1826_v20  ;;  %v2369_v35 = vpack.c.bf16 %v1827_v14, %v1827_v14  ;;  %v2370_v19 = vpack.c.bf16 %v1828_v32, %v1828_v32 }
 0x2ad   : > { %v2371_v40 = vpack.c.bf16 %v1829_v36, %v1829_v36  ;;  %v1507_v63 = vadd.f32 %v3178_v52, %v1485_v18  ;;  %v1508_v16 = vadd.f32 %v3178_v52, %v1486_v58  ;;  %v1487_v42 = vadd.f32 %v1468_v22, %v3244_v1 }
 0x2ae   : > { %v1986_v5 = vunpack.c.l.b16 %v2368_v62  ;;  %v1987_v15 = vunpack.c.l.b16 %v2369_v35  ;;  %v1988_v30 = vunpack.c.l.b16 %v2370_v19  ;;  %v2038_v29 = vsel %vm2005_vm11, %v2037_v46, %v2036_v7 }
 0x2af   : > { %v1989_v23 = vunpack.c.l.b16 %v2371_v40  ;;  %v1522_v45 = vmax.f32 %v1506_v44, 0.0  ;;  %v1524_v17 = vmax.f32 %v1508_v16, 0.0  ;;  %v1509_v43 = vadd.f32 %v3178_v52, %v1487_v42 }
 0x2b0   : > { %v2039_v11 = vrot.slane %v1986_v5, 4  ;;  %v2041_v24 = vrot.slane %v1987_v15, 3  ;;  %v2043_v25 = vrot.slane %v1988_v30, 2  ;;  %v1523_v3 = vmax.f32 %v1507_v63, 0.0 }
 0x2b1   : > { %v2045_v4 = vrot.slane %v1989_v23, 1  ;;  %v1532_v31 = vmax.f32 %v1522_v45, %v1524_v17  ;;  %v1525_v28 = vmax.f32 %v1509_v43, 0.0 }
 0x2b2   : > { %v2040_v56 = vsel %vm2008_vm12, %v2039_v11, %v2038_v29 }
 0x2b3   : > { %v2042_v41 = vsel %vm2011_vm13, %v2041_v24, %v2040_v56  ;;  %v1644_v1 = vcombine.high %v1532_v31, %v1532_v31  ;;  %v1651_v22 = vrot.slane %v1532_v31, %v3188_v61  ;;  %v1533_v59 = vmax.f32 %v1523_v3, %v1525_v28 }
 0x2b4   : > { %v2044_v12 = vsel %vm2014_vm14, %v2043_v25, %v2042_v41 }
 0x2b5   : > { %v2046_v60 = vsel %vm2017_vm15, %v2045_v4, %v2044_v12  ;;  %v1658_v50 = vrot.slane %v1644_v1, %v3188_v61  ;;  %v1659_v52 = vcombine.high %v1651_v22, %v1651_v22  ;;  %v2305_v53 = vrot.slane %v1651_v22, 9 }
 0x2b6   : > { %v2063_v37 = vpack.c.b16 %v2046_v60, %v2046_v60  ;;  %v1661_v38 = vcombine.high %v1533_v59, %v1533_v59  ;;  %v1668_v33 = vrot.slane %v1533_v59, %v3188_v61 }
 0x2b7   : > { %v1660_v21 = vcombine.high %v1658_v50, %v1658_v50  ;;  %v2306_v39 = vrot.slane %v1659_v52, 9  ;;  %v2307_v0 = vrot.slane %v1658_v50, 9  ;;  %v1830_v34 = vmax.f32 %v1651_v22, %v2305_v53 }
 0x2b8   : > { %2072 = vst.msk [vmem:[%s3237_s15 + $0x8] sm:$0xf] %vm2069_vm0, %v2063_v37  ;;  %v1675_v49 = vrot.slane %v1661_v38, %v3188_v61  ;;  %v1676_v27 = vcombine.high %v1668_v33, %v1668_v33  ;;  %v2309_v44 = vrot.slane %v1668_v33, 9 }
 0x2b9   : > { %v2308_v26 = vrot.slane %v1660_v21, 9  ;;  %v1831_v9 = vmax.f32 %v1659_v52, %v2306_v39  ;;  %v1832_v47 = vmax.f32 %v1658_v50, %v2307_v0  ;;  %v2372_v54 = vpack.c.bf16 %v1830_v34, %v1830_v34 }
 0x2ba   : > { %v1677_v48 = vcombine.high %v1675_v49, %v1675_v49  ;;  %v2310_v2 = vrot.slane %v1676_v27, 9  ;;  %v2311_v55 = vrot.slane %v1675_v49, 9  ;;  %v1834_v51 = vmax.f32 %v1668_v33, %v2309_v44 }
 0x2bb   : > { %v1833_v10 = vmax.f32 %v1660_v21, %v2308_v26  ;;  %v2373_v57 = vpack.c.bf16 %v1831_v9, %v1831_v9  ;;  %v2374_v8 = vpack.c.bf16 %v1832_v47, %v1832_v47  ;;  %v1990_v62 = vunpack.c.l.b16 %v2372_v54 }
 0x2bc   : > { %v2312_v13 = vrot.slane %v1677_v48, 9  ;;  %v1835_v20 = vmax.f32 %v1676_v27, %v2310_v2  ;;  %v1836_v14 = vmax.f32 %v1675_v49, %v2311_v55  ;;  %v2376_v32 = vpack.c.bf16 %v1834_v51, %v1834_v51 }
 0x2bd   : > { %v2375_v36 = vpack.c.bf16 %v1833_v10, %v1833_v10  ;;  %v1991_v6 = vunpack.c.l.b16 %v2373_v57  ;;  %v1992_v61 = vunpack.c.l.b16 %v2374_v8 }
 0x2be   : > { %v1837_v46 = vmax.f32 %v1677_v48, %v2312_v13  ;;  %v2377_v18 = vpack.c.bf16 %v1835_v20, %v1835_v20  ;;  %v2378_v58 = vpack.c.bf16 %v1836_v14, %v1836_v14  ;;  %v1994_v7 = vunpack.c.l.b16 %v2376_v32 }
 0x2bf   : > { %v1993_v35 = vunpack.c.l.b16 %v2375_v36  ;;  %v2047_v19 = vrot.slane %v1991_v6, 7  ;;  %v2049_v40 = vrot.slane %v1992_v61, 6 }
 0x2c0   : > { %v2379_v63 = vpack.c.bf16 %v1837_v46, %v1837_v46  ;;  %v1995_v16 = vunpack.c.l.b16 %v2377_v18  ;;  %v1996_v5 = vunpack.c.l.b16 %v2378_v58  ;;  %v2053_v15 = vrot.slane %v1994_v7, 4 }
 0x2c1   : > { %v2048_v30 = vsel %vm1999_vm9, %v2047_v19, %v1990_v62  ;;  %v2051_v42 = vrot.slane %v1993_v35, 5 }
 0x2c2   : > { %v2050_v23 = vsel %vm2002_vm10, %v2049_v40, %v2048_v30  ;;  %v1997_v29 = vunpack.c.l.b16 %v2379_v63  ;;  %v2055_v45 = vrot.slane %v1995_v16, 3  ;;  %v2057_v17 = vrot.slane %v1996_v5, 2 }
 0x2c3   : > { %v2052_v11 = vsel %vm2005_vm11, %v2051_v42, %v2050_v23 }
 0x2c4   : > { %v2054_v24 = vsel %vm2008_vm12, %v2053_v15, %v2052_v11  ;;  %v2059_v25 = vrot.slane %v1997_v29, 1 }
 0x2c5   : > { %v2056_v43 = vsel %vm2011_vm13, %v2055_v45, %v2054_v24 }
 0x2c6   : > { %v2058_v4 = vsel %vm2014_vm14, %v2057_v17, %v2056_v43 }
 0x2c7   : > { %v2060_v31 = vsel %vm2017_vm15, %v2059_v25, %v2058_v4 }
 0x2c8   : > { %v2064_v56 = vpack.c.b16 %v2060_v31, %v2060_v31 }
 0x2ca   : > { %2073 = vst.msk [vmem:[%s3237_s15 + $0xc] sm:$0xf] %vm2069_vm0, %v2064_v56 }
 0x2cb PF: > { %s15_s18 = sadd.s32 1, %s2552_s18  }
 0x2cc   : > { %p12_p4 = scmp.ge.s32.totalorder %s15_s18, 4  }
 0x2ce   :  { %14 = sbr.rel (!%p12_p4) target bundleno = 1 (0x1), region = 74 }

// kernel: onnx_vgg2l_forward.3
= control target key start
LH: loop header
LB: loop body
LE: loop exit
PB: predicated region body
PF: predicated region fallthrough
CT: control target
= control target key end

     0   :  { %s2663_s18 = smov 0   ;;  %s3190_s0 = inlined_call_operand.vmem [shape: bf16[2,4,8,64], index: 0, kind: input, shape index: {}]   ;;  %s3191_s1 = inlined_call_operand.vmem [shape: bf16[3,192,128], index: 1, kind: input, shape index: {}]   ;;  %s3192_s2 = inlined_call_operand.vmem [shape: f32[1,128], index: 2, kind: input, shape index: {}]   ;;  %s3193_s3 = inlined_call_operand.vmem [shape: bf16[3,384,128], index: 3, kind: input, shape index: {}]   ;;  %s3194_s4 = inlined_call_operand.vmem [shape: f32[1,128], index: 4, kind: input, shape index: {}]   ;;  %s3195_s5 = inlined_call_operand.vmem [shape: f32[2,2,4,128], index: 5, kind: output, shape index: {}]  }
   0x1 LB: > { %s2012_s19 = sadd.s32 4294967295, %s2628_s18   ;;  %p2016_p0 = scmp.ge.s32.totalorder %s2628_s18, 1  ;;  %s2628_s18 = sphi %s2663_s18, %s15_s18  }
   0x2   : > { %p187_p1 = scmp.lt.s32.totalorder %s2628_s18, 3 }
   0x4   : > { %p188_p2 = pnand %p2016_p0, %p187_p1 }
   0x5   : > { %p215_p3 = scmp.lt.s32.totalorder (!%p188_p2), %s2012_s19, 1  ;;  %s2631_s9 = smov (!%p188_p2), 64  }
   0x6   : > { %191 = sbr.rel (%p188_p2) target bundleno = 719 (0x2cf), region = 40 }
   0xb   : > { %v2514_v0 = vld [vmem:[%s3191_s1 + $0x38] sm:$0xff]   ;;  %v2630_v1 = vmov 0   ;;  %s3201_s19 = smov (!%p215_p3, %s2012_s19), 1  ;;  %v2516_v3 = vld [vmem:[%s3191_s1 + $0x30] sm:$0xff]   ;;  %v2518_v5 = vld [vmem:[%s3191_s1 + $0x28] sm:$0xff]   ;;  %vm293_vm0 = vcmask 1043456  }
   0xc   : > { %606 = vmatprep.subr.bf16.mxu1 %v2630_v1  ;;  %473 = vmatprep.subr.bf16.mxu0 %v2630_v1  ;;  %v2515_v2 = vld [vmem:[%s3191_s1 + $0x98] sm:$0xff]   ;;  %s2320_s26 = sshll.u32 %s3201_s19, 4  ;;  %v2517_v4 = vld [vmem:[%s3191_s1 + $0x90] sm:$0xff]   ;;  %v2519_v10 = vld [vmem:[%s3191_s1 + $0x88] sm:$0xff]   ;;  %vm294_vm1 = vsmask.f32 3328 }
   0xd   : > { %607 = vmatpush1.bf16.msra.mxu1 %v2514_v0  ;;  %474 = vmatpush1.bf16.msra.mxu0 %v2515_v2  ;;  %s219_s8 = scalar_lea.vmem %s3190_s0, %s2320_s26  ;;  %v2520_v12 = vld [vmem:[%s3191_s1 + $0x20] sm:$0xff]   ;;  %v2522_v15 = vld [vmem:[%s3191_s1 + $0x18] sm:$0xff]   ;;  %v2524_v20 = vld [vmem:[%s3191_s1 + $0x10] sm:$0xff]   ;;  %vm308_vm3 = vcmask 523264   ;;  %vm274_vm4 = vcmask 1040384   ;;  %vm1944_vm7 = vcmask 1041409  }
   0xe   : > { %608 = vmatprep.subr.bf16.mxu1 %v2630_v1  ;;  %475 = vmatprep.subr.bf16.mxu0 %v2630_v1  ;;  %v2510_v6 = vld [vmem:[%s219_s8] ss:$0 sps:$4 sm:$0xff]   ;;  %v2696_v7 = vld [vmem:[%s219_s8 + $0x8] ss:$0 sps:$4 sm:$0xff]   ;;  %v2512_v9 = vld [vmem:[%s219_s8 + $0x4] ss:$0 sps:$4 sm:$0xff]  }
   0xf   : > { %300 = vrot.lane.b32.xlu0 %v2510_v6, %s2631_s9  ;;  %v243_v8 = vshrl.u32 %v2510_v6, 16  ;;  %304 = vrot.lane.b32.xlu1 %v2696_v7, %s2631_s9  ;;  %v2703_v11 = vld [vmem:[%s219_s8 + $0xc] ss:$0 sps:$4 sm:$0xff]   ;;  %v2521_v13 = vld [vmem:[%s3191_s1 + $0x80] sm:$0xff]   ;;  %v246_v16 = vshll.u32 %v2510_v6, 16  ;;  %v250_v17 = vshrl.u32 %v2512_v9, 16  ;;  %vm2760_vm2 = vmand %vm293_vm0, %vm294_vm1 }
  0x10   : > { %v2523_v18 = vld [vmem:[%s3191_s1 + $0x78] sm:$0xff]   ;;  %v267_v21 = vshll.u32 %v2703_v11, 16  ;;  %v2525_v22 = vld [vmem:[%s3191_s1 + $0x70] sm:$0xff]   ;;  %v260_v23 = vshll.u32 %v2696_v7, 16  ;;  %v253_v26 = vshll.u32 %v2512_v9, 16  ;;  %v257_v27 = vshrl.u32 %v2696_v7, 16 }
  0x11   : > { %609 = vmatpush1.bf16.msra.mxu1 %v2516_v3  ;;  %476 = vmatpush1.bf16.msra.mxu0 %v2517_v4  ;;  %v245_v14 = vrot.slane %v243_v8, 7  ;;  %v252_v24 = vrot.slane %v250_v17, 7  ;;  %v281_v25 = vrot.slane %v246_v16, 1  ;;  %v2526_v29 = vld [vmem:[%s3191_s1 + $0x8] sm:$0xff]   ;;  %v264_v32 = vshrl.u32 %v2703_v11, 16  ;;  %v2528_v38 = vld [vmem:[%s3191_s1] sm:$0xff]  }
  0x12   : > { %610 = vmatprep.subr.bf16.mxu1 %v2630_v1  ;;  %477 = vmatprep.subr.bf16.mxu0 %v2630_v1  ;;  %v285_v28 = vrot.slane %v260_v23, 1  ;;  %v283_v31 = vrot.slane %v253_v26, 1  ;;  %v287_v33 = vrot.slane %v267_v21, 1  ;;  %v2527_v34 = vld [vmem:[%s3191_s1 + $0x68] sm:$0xff]   ;;  %v2529_v40 = vld [vmem:[%s3191_s1 + $0x60] sm:$0xff]   ;;  %v2530_v50 = vld [vmem:[%s3191_s1 + $0x58] sm:$0xff]  }
  0x13   : > { %302 = vrot.lane.b32.xlu0 %v2512_v9, %s2631_s9  ;;  %306 = vrot.lane.b32.xlu1 %v2703_v11, %s2631_s9  ;;  %v2722_v19 = vor.u32 %v246_v16, %v245_v14  ;;  %v2741_v30 = vor.u32 %v253_v26, %v252_v24  ;;  %v282_v35 = vor.u32 %v281_v25, %v243_v8  ;;  %v2531_v51 = vld [vmem:[%s3191_s1 + $0xb8] sm:$0xff]   ;;  %v2532_v52 = vld [vmem:[%s3191_s1 + $0x50] sm:$0xff]   ;;  %vm275_vm5 = vsmask.f32 256  ;;  %s2321_s13 = sshll.u32 %s3201_s19, 3 }
  0x14   : > { %v284_v36 = vor.u32 %v283_v31, %v250_v17  ;;  %v286_v37 = vor.u32 %v285_v28, %v257_v27  ;;  %v288_v39 = vor.u32 %v287_v33, %v264_v32  ;;  %v2533_v53 = vld [vmem:[%s3191_s1 + $0xb0] sm:$0xff]   ;;  %v2534_v54 = vld [vmem:[%s3191_s1 + $0x48] sm:$0xff]   ;;  %v2536_v56 = vld [vmem:[%s3191_s1 + $0x40] sm:$0xff]   ;;  %v259_v58 = vrot.slane %v257_v27, 7  ;;  %s224_s16 = scalar_lea.vmem %s3195_s5, %s2321_s13 }
  0x15   : > { %611 = vmatpush1.bf16.msra.mxu1 %v2518_v5  ;;  %478 = vmatpush1.bf16.msra.mxu0 %v2519_v10  ;;  %v296_v42 = vsel %vm2760_vm2, %v282_v35, 0  ;;  %v2535_v55 = vld [vmem:[%s3191_s1 + $0xa8] sm:$0xff]   ;;  %v2537_v57 = vld [vmem:[%s3191_s1 + $0xa0] sm:$0xff]   ;;  %vm2820_vm6 = vmand %vm274_vm4, %vm275_vm5  ;;  %v266_v60 = vrot.slane %v264_v32, 7  ;;  %vm1946_vm8 = vcmask 1042434   ;;  %vm1948_vm9 = vcmask 1043459  }
  0x16   : > { %612 = vmatprep.subr.bf16.mxu1 %v2630_v1  ;;  %479 = vmatprep.subr.bf16.mxu0 %v2630_v1  ;;  %v297_v43 = vsel %vm2760_vm2, %v284_v36, 0  ;;  %v2770_v44 = vsel %vm2760_vm2, %v286_v37, 0  ;;  %v2774_v45 = vsel %vm2760_vm2, %v288_v39, 0  ;;  %v2068_v46 = vcombine.low %v2630_v1, %v296_v42  ;;  %v2538_v11 = vld [vmem:[%s3191_s1 + $0xf8] sm:$0xff]   ;;  %v2539_v17 = vld [vmem:[%s3191_s1 + $0xf0] sm:$0xff]   ;;  %v2548_v26 = vld [vmem:[%s3191_s1 + $0x108] sm:$0xff]  }
  0x17   : > { %v2050_v47 = vcombine.low %v296_v42, %v297_v43  ;;  %v2052_v48 = vcombine.low %v2770_v44, %v2774_v45  ;;  %v2781_v49 = vcombine.low %v297_v43, %v2770_v44  ;;  %v262_v61 = vor.u32 %v260_v23, %v259_v58  ;;  %v2545_v23 = vld [vmem:[%s3191_s1 + $0xc0] sm:$0xff]   ;;  %v2546_v24 = vld [vmem:[%s3191_s1 + $0x118] sm:$0xff]   ;;  %v2547_v25 = vld [vmem:[%s3191_s1 + $0x110] sm:$0xff]  }
  0x18   : > { %2083 = vmatprep.mubr.msk.bf16.mxu1 %vm308_vm3, %v2068_v46  ;;  %v277_v62 = vsel %vm2820_vm6, 0, %v2722_v19  ;;  %v269_v63 = vor.u32 %v267_v21, %v266_v60  ;;  %v278_v6 = vsel %vm2820_vm6, 0, %v2741_v30  ;;  %v2541_v19 = vld [vmem:[%s3191_s1 + $0xe0] sm:$0xff]   ;;  %v2543_v21 = vld [vmem:[%s3191_s1 + $0xd0] sm:$0xff]   ;;  %v2110_v28 = vcombine.low %v2774_v45, %v2630_v1  ;;  %v2550_v30 = vld [vmem:[%s3193_s3 + $0x78] sm:$0xff]  }
  0x19   : > { %613 = vmatpush1.bf16.msra.mxu1 %v2520_v12  ;;  %480 = vmatpush1.bf16.msra.mxu0 %v2521_v13  ;;  %v279_v2 = vsel %vm2820_vm6, 0, %v262_v61  ;;  %v2549_v27 = vld [vmem:[%s3191_s1 + $0x100] sm:$0xff]   ;;  %v2551_v31 = vld [vmem:[%s3193_s3 + $0x38] sm:$0xff]   ;;  %v2553_v33 = vld [vmem:[%s3193_s3 + $0x70] sm:$0xff]  }
  0x1a   : > { %614 = vmatprep.subr.bf16.mxu1 %v2630_v1  ;;  %481 = vmatprep.subr.bf16.mxu0 %v2630_v1  ;;  %v280_v8 = vsel %vm2820_vm6, 0, %v269_v63  ;;  %v2552_v32 = vld [vmem:[%s3193_s3 + $0x138] sm:$0xff]   ;;  %v2556_v35 = vld [vmem:[%s3193_s3 + $0x130] sm:$0xff]   ;;  %v2557_v37 = vld [vmem:[%s3193_s3 + $0x68] sm:$0xff]  }
  0x1b   : > { %2065 = vmatprep.mubr.msk.bf16.mxu0 %vm308_vm3, %v2050_v47  ;;  %v2555_v36 = vld [vmem:[%s3193_s3 + $0x30] sm:$0xff]   ;;  %v2560_v39 = vld [vmem:[%s3193_s3 + $0x128] sm:$0xff]   ;;  %v2561_v42 = vld [vmem:[%s3193_s3 + $0x60] sm:$0xff]  }
  0x1c   : > { %v2562_v43 = vld [vmem:[%s3193_s3 + $0xe8] sm:$0xff]   ;;  %v2563_v44 = vld [vmem:[%s3193_s3 + $0x20] sm:$0xff]   ;;  %v2565_v46 = vld [vmem:[%s3193_s3 + $0x58] sm:$0xff]  }
  0x1d   : > { %615 = vmatpush1.bf16.msra.mxu1 %v2522_v15  ;;  %482 = vmatpush1.bf16.msra.mxu0 %v2523_v18  ;;  %v2540_v18 = vld [vmem:[%s3191_s1 + $0xe8] sm:$0xff]   ;;  %v2564_v45 = vld [vmem:[%s3193_s3 + $0x120] sm:$0xff]   ;;  %v2581_v63 = vld [vmem:[%s3193_s3 + $0x1f8] sm:$0xff]  }
  0x1e   : > { %616 = vmatprep.subr.bf16.mxu1 %v2630_v1  ;;  %483 = vmatprep.subr.bf16.mxu0 %v2630_v1  ;;  %v2566_v47 = vld [vmem:[%s3193_s3 + $0xe0] sm:$0xff]   ;;  %v2578_v60 = vld [vmem:[%s3193_s3 + $0xc8] sm:$0xff]   ;;  %v2595_v59 = vld [vmem:[%s3193_s3 + $0x198] sm:$0xff]  }
  0x1f   : > { %v2577_v58 = vld [vmem:[%s3193_s3 + $0x40] sm:$0xff]   ;;  %v2608_v41 = vld [vmem:[%s3193_s3 + $0xa8] sm:$0xff]  }
  0x20   : > { %v2579_v61 = vld [vmem:[%s3193_s3] sm:$0xff]  }
  0x21   : > { %617 = vmatpush1.bf16.msra.mxu1 %v2524_v20  ;;  %484 = vmatpush1.bf16.msra.mxu0 %v2525_v22  ;;  %v2542_v20 = vld [vmem:[%s3191_s1 + $0xd8] sm:$0xff]   ;;  %v2544_v22 = vld [vmem:[%s3191_s1 + $0xc8] sm:$0xff]  }
  0x22   : > { %618 = vmatprep.subr.bf16.mxu1 %v2630_v1  ;;  %485 = vmatprep.subr.bf16.mxu0 %v2630_v1 }
  0x25   : > { %619 = vmatpush1.bf16.msra.mxu1 %v2526_v29  ;;  %486 = vmatpush1.bf16.msra.mxu0 %v2527_v34  ;;  %v2554_v34 = vld [vmem:[%s3193_s3 + $0xf8] sm:$0xff]  }
  0x26   : > { %620 = vmatprep.subr.bf16.mxu1 %v2630_v1  ;;  %487 = vmatprep.subr.bf16.mxu0 %v2630_v1 }
  0x29   : > { %621 = vmatpush1.bf16.msra.mxu1 %v2528_v38  ;;  %488 = vmatpush1.bf16.msra.mxu0 %v2529_v40  ;;  %v2558_v38 = vld [vmem:[%s3193_s3 + $0xf0] sm:$0xff]   ;;  %v2559_v40 = vld [vmem:[%s3193_s3 + $0x28] sm:$0xff]  }
  0x2a   : > { %630 = vmatprep.subr.bf16.mxu1 %v2630_v1  ;;  %497 = vmatprep.subr.bf16.mxu0 %v2630_v1 }
  0x2d   : > { %631 = vmatpush2.bf16.msra.mxu1 %v2530_v50  ;;  %498 = vmatpush2.bf16.msra.mxu0 %v2531_v51  ;;  %v2569_v50 = vld [vmem:[%s3193_s3 + $0x50] sm:$0xff]   ;;  %v2570_v51 = vld [vmem:[%s3193_s3 + $0xd8] sm:$0xff]  }
  0x2e   : > { %632 = vmatprep.subr.bf16.mxu1 %v2630_v1  ;;  %499 = vmatprep.subr.bf16.mxu0 %v2630_v1 }
  0x31   : > { %633 = vmatpush2.bf16.msra.mxu1 %v2532_v52  ;;  %500 = vmatpush2.bf16.msra.mxu0 %v2533_v53  ;;  %v2571_v52 = vld [vmem:[%s3193_s3 + $0x10] sm:$0xff]  }
  0x32   : > { %634 = vmatprep.subr.bf16.mxu1 %v2630_v1  ;;  %501 = vmatprep.subr.bf16.mxu0 %v2630_v1  ;;  %v2572_v53 = vld [vmem:[%s3193_s3 + $0x110] sm:$0xff]  }
  0x35   : > { %635 = vmatpush2.bf16.msra.mxu1 %v2534_v54  ;;  %502 = vmatpush2.bf16.msra.mxu0 %v2535_v55  ;;  %v2573_v54 = vld [vmem:[%s3193_s3 + $0x48] sm:$0xff]   ;;  %v2574_v55 = vld [vmem:[%s3193_s3 + $0xd0] sm:$0xff]  }
  0x36   : > { %636 = vmatprep.subr.bf16.mxu1 %v2630_v1  ;;  %503 = vmatprep.subr.bf16.mxu0 %v2630_v1 }
  0x39   : > { %637 = vmatpush2.bf16.msra.mxu1 %v2536_v56  ;;  %504 = vmatpush2.bf16.msra.mxu0 %v2537_v57  ;;  %v2575_v56 = vld [vmem:[%s3193_s3 + $0x8] sm:$0xff]  }
  0x3a   : > { %758 = vmatprep.subr.bf16.mxu0 %v2630_v1  ;;  %2325 = vmatprep.subr.bf16.mxu1 %v2552_v32  ;;  %v2576_v57 = vld [vmem:[%s3193_s3 + $0x108] sm:$0xff]  }
  0x81   : > { %v301_v0 = vpop.permute.xlu0 %300  ;;  %v305_v4 = vpop.permute.xlu1 %304 }
  0x82   : > { %v311_v3 = vsel %vm308_vm3, %v277_v62, %v301_v0  ;;  %v317_v7 = vsel %vm308_vm3, %v279_v2, %v305_v4  ;;  %v2580_v62 = vld [vmem:[%s3193_s3 + $0x100] sm:$0xff]   ;;  %v3001_v2 = vld [vmem:[%s3193_s3 + $0x178] sm:$0xff]  }
  0x83   : > { %v2067_v5 = vcombine.low %v2630_v1, %v311_v3  ;;  %v2582_v0 = vld [vmem:[%s3193_s3 + $0xc0] sm:$0xff]  }
  0x85   : > { %v303_v9 = vpop.permute.xlu0 %302  ;;  %639 = vmatmul.mubr.bf16.vlgmr.msra.gmra.mxu1 %v2067_v5  ;;  %v307_v12 = vpop.permute.xlu1 %306 }
  0x86   : > { %v314_v10 = vsel %vm308_vm3, %v278_v6, %v303_v9  ;;  %2084 = vmatprep.mubr.msk.bf16.mxu1 %vm308_vm3, %v2781_v49  ;;  %v320_v15 = vsel %vm308_vm3, %v280_v8, %v307_v12  ;;  %2326 = vmatpush3.bf16.msra.mxu1 %v2554_v34 }
  0x87   : > { %v2049_v13 = vcombine.low %v311_v3, %v314_v10  ;;  %v2069_v14 = vcombine.low %v314_v10, %v317_v7  ;;  %v2051_v16 = vcombine.low %v317_v7, %v320_v15  ;;  %v2109_v29 = vcombine.low %v320_v15, %v2630_v1  ;;  %2327 = vmatprep.subr.bf16.mxu1 %v2556_v35 }
  0x89   : > { %506 = vmatmul.mubr.bf16.vlgmr.msra.gmra.mxu0 %v2049_v13 }
  0x8a   : > { %759 = vmatpush1.bf16.msra.mxu0 %v2538_v11  ;;  %2066 = vmatprep.mubr.msk.bf16.mxu0 %vm308_vm3, %v2052_v48  ;;  %v2567_v48 = vld [vmem:[%s3193_s3 + $0x18] sm:$0xff]  }
  0x8b   : > { %760 = vmatprep.subr.bf16.mxu0 %v2630_v1  ;;  %2328 = vmatpush3.bf16.msra.mxu1 %v2558_v38 }
  0x8c   : > { %2329 = vmatprep.subr.bf16.mxu1 %v2560_v39 }
  0x8d   : > { %647 = vmatmul.mubr.bf16.gmra.mxu1 %v2069_v14 }
  0x8e   : > { %761 = vmatpush1.bf16.msra.mxu0 %v2539_v17 }
  0x8f   : > { %762 = vmatprep.subr.bf16.mxu0 %v2630_v1  ;;  %2330 = vmatpush3.bf16.msra.mxu1 %v2562_v43 }
  0x90   : > { %2331 = vmatprep.subr.bf16.mxu1 %v2564_v45 }
  0x91   : > { %514 = vmatmul.mubr.bf16.gmra.mxu0 %v2051_v16 }
  0x92   : > { %763 = vmatpush1.bf16.msra.mxu0 %v2540_v18  ;;  %2123 = vmatprep.mubr.msk.bf16.mxu0 %vm308_vm3, %v2781_v49  ;;  %v2568_v49 = vld [vmem:[%s3193_s3 + $0x118] sm:$0xff]  }
  0x93   : > { %764 = vmatprep.subr.bf16.mxu0 %v2630_v1  ;;  %2332 = vmatpush3.bf16.msra.mxu1 %v2566_v47 }
  0x94   : > { %2333 = vmatprep.subr.bf16.mxu1 %v2568_v49 }
  0x96   : > { %765 = vmatpush1.bf16.msra.mxu0 %v2541_v19 }
  0x97   : > { %766 = vmatprep.subr.bf16.mxu0 %v2630_v1  ;;  %2334 = vmatpush3.bf16.msra.mxu1 %v2570_v51 }
  0x98   : > { %2335 = vmatprep.subr.bf16.mxu1 %v2572_v53 }
  0x9a   : > { %767 = vmatpush1.bf16.msra.mxu0 %v2542_v20  ;;  %v2125_v20 = vld [vmem:[%s3192_s2] ss:$0 sm:$0xff] }
  0x9b   : > { %768 = vmatprep.subr.bf16.mxu0 %v2630_v1  ;;  %2336 = vmatpush3.bf16.msra.mxu1 %v2574_v55 }
  0x9c   : > { %2337 = vmatprep.subr.bf16.mxu1 %v2576_v57 }
  0x9e   : > { %769 = vmatpush1.bf16.msra.mxu0 %v2543_v21 }
  0x9f   : > { %770 = vmatprep.subr.bf16.mxu0 %v2630_v1  ;;  %2338 = vmatpush3.bf16.msra.mxu1 %v2578_v60  ;;  %v2585_v60 = vld [vmem:[%s3193_s3 + $0x1f0] sm:$0xff]  }
  0xa0   : > { %2339 = vmatprep.subr.bf16.mxu1 %v2580_v62 }
  0xa2   : > { %771 = vmatpush1.bf16.msra.mxu0 %v2544_v22 }
  0xa3   : > { %772 = vmatprep.subr.bf16.mxu0 %v2630_v1  ;;  %2340 = vmatpush3.bf16.msra.mxu1 %v2582_v0 }
  0xa4   : > { %2439 = vmatprep.subr.bf16.mxu1 %v3001_v2 }
  0xa6   : > { %773 = vmatpush1.bf16.msra.mxu0 %v2545_v23 }
  0xa7   : > { %782 = vmatprep.subr.bf16.mxu0 %v2630_v1 }
  0xaa   : > { %783 = vmatpush2.bf16.msra.mxu0 %v2546_v24 }
  0xab   : > { %784 = vmatprep.subr.bf16.mxu0 %v2630_v1 }
  0xae   : > { %785 = vmatpush2.bf16.msra.mxu0 %v2547_v25 }
  0xaf   : > { %786 = vmatprep.subr.bf16.mxu0 %v2630_v1 }
  0xb2   : > { %787 = vmatpush2.bf16.msra.mxu0 %v2548_v26 }
  0xb3   : > { %788 = vmatprep.subr.bf16.mxu0 %v2630_v1 }
  0xb6   : > { %789 = vmatpush2.bf16.msra.mxu0 %v2549_v27 }
  0xb7   : > { %2363 = vmatprep.subr.bf16.mxu0 %v2550_v30 }
  0xb9   : > { %791 = vmatmul.mubr.bf16.vlgmr.msra.gmra.mxu0 %v2069_v14 }
  0xba   : > { %2124 = vmatprep.mubr.msk.bf16.mxu0 %vm308_vm3, %v2110_v28  ;;  %2364 = vmatpush3.bf16.msra.mxu0 %v2551_v31 }
  0xbb   : > { %2365 = vmatprep.subr.bf16.mxu0 %v2553_v33 }
  0xbe   : > { %2366 = vmatpush3.bf16.msra.mxu0 %v2555_v36 }
  0xbf   : > { %2367 = vmatprep.subr.bf16.mxu0 %v2557_v37 }
  0xc1   : > { %799 = vmatmul.mubr.bf16.gmra.mxu0 %v2109_v29 }
  0xc2   : > { %2368 = vmatpush3.bf16.msra.mxu0 %v2559_v40 }
  0xc3   : > { %2369 = vmatprep.subr.bf16.mxu0 %v2561_v42 }
  0xc6   : > { %2370 = vmatpush3.bf16.msra.mxu0 %v2563_v44 }
  0xc7   : > { %2371 = vmatprep.subr.bf16.mxu0 %v2565_v46 }
  0xca   : > { %2372 = vmatpush3.bf16.msra.mxu0 %v2567_v48 }
  0xcb   : > { %2373 = vmatprep.subr.bf16.mxu0 %v2569_v50 }
  0xce   : > { %2374 = vmatpush3.bf16.msra.mxu0 %v2571_v52 }
  0xcf   : > { %2375 = vmatprep.subr.bf16.mxu0 %v2573_v54 }
  0xd2   : > { %2376 = vmatpush3.bf16.msra.mxu0 %v2575_v56  ;;  %v2583_v56 = vld [vmem:[%s3193_s3 + $0x1b8] sm:$0xff]  }
  0xd3   : > { %2377 = vmatprep.subr.bf16.mxu0 %v2577_v58 }
  0xd6   : > { %2378 = vmatpush3.bf16.msra.mxu0 %v2579_v61 }
  0xd7   : > { %2401 = vmatprep.subr.bf16.mxu0 %v2581_v63 }
 0x145   : > { %v640_v3 = vpop.f32.mrf.mxu1 }
 0x147   : > { %v642_v4 = vpop.f32.mrf.mxu1 }
 0x148   : > { %v2586_v4 = vld [vmem:[%s3193_s3 + $0x1b0] sm:$0xff]  }
 0x149   : > { %v507_v5 = vpop.f32.mrf.mxu0  ;;  %v643_v6 = vpop.f32.mrf.mxu1 }
 0x14a   : > { %v641_v19 = vadd.f32 %v640_v3, %v507_v5 }
 0x14b   : > { %v509_v7 = vpop.f32.mrf.mxu0  ;;  %v645_v8 = vpop.f32.mrf.mxu1 }
 0x14d   : > { %v510_v9 = vpop.f32.mrf.mxu0  ;;  %v648_v10 = vpop.f32.mrf.mxu1 }
 0x14e   : > { %v644_v24 = vadd.f32 %v643_v6, %v510_v9 }
 0x14f   : > { %v512_v11 = vpop.f32.mrf.mxu0  ;;  %v650_v12 = vpop.f32.mrf.mxu1 }
 0x150   : > { %v2588_v11 = vld [vmem:[%s3193_s3 + $0x1e8] sm:$0xff]  }
 0x151   : > { %v515_v13 = vpop.f32.mrf.mxu0  ;;  %v651_v14 = vpop.f32.mrf.mxu1 }
 0x152   : > { %v649_v30 = vadd.f32 %v648_v10, %v515_v13  ;;  %v2587_v10 = vld [vmem:[%s3193_s3 + $0x170] sm:$0xff]  }
 0x153   : > { %v517_v15 = vpop.f32.mrf.mxu0  ;;  %v653_v16 = vpop.f32.mrf.mxu1 }
 0x155   : > { %v518_v17 = vpop.f32.mrf.mxu0 }
 0x156   : > { %v652_v45 = vadd.f32 %v651_v14, %v518_v17  ;;  %v2589_v17 = vld [vmem:[%s3193_s3 + $0x1a8] sm:$0xff]  }
 0x157   : > { %v520_v18 = vpop.f32.mrf.mxu0 }
 0x179   : > { %v792_v21 = vpop.f32.mrf.mxu0 }
 0x17a   : > { %v807_v22 = vadd.f32 %v792_v21, %v641_v19 }
 0x17b   : > { %v794_v23 = vpop.f32.mrf.mxu0 }
 0x17c   : > { %v817_v25 = vadd.f32 %v2125_v20, %v807_v22  ;;  %v2591_v22 = vld [vmem:[%s3193_s3 + $0x1e0] sm:$0xff]  }
 0x17d   : > { %v795_v26 = vpop.f32.mrf.mxu0 }
 0x17e   : > { %v821_v27 = vmax.f32 %v817_v25, 0.0  ;;  %v808_v28 = vadd.f32 %v795_v26, %v644_v24  ;;  %v2592_v25 = vld [vmem:[%s3193_s3 + $0x1a0] sm:$0xff]  }
 0x17f   : > { %v797_v29 = vpop.f32.mrf.mxu0 }
 0x180   : > { %v3007_v31 = vpack.c.bf16 %v821_v27, %v821_v27  ;;  %v818_v32 = vadd.f32 %v2125_v20, %v808_v28 }
 0x181   : > { %v800_v33 = vpop.f32.mrf.mxu0 }
 0x182   : > { %v830_v34 = vshrl.u32 %v3007_v31, 16  ;;  %v822_v35 = vmax.f32 %v818_v32, 0.0  ;;  %v809_v36 = vadd.f32 %v800_v33, %v649_v30  ;;  %v833_v37 = vshll.u32 %v3007_v31, 16  ;;  %v2593_v30 = vld [vmem:[%s3193_s3 + $0x160] sm:$0xff]   ;;  %v2597_v33 = vld [vmem:[%s3193_s3 + $0x1d0] sm:$0xff]  }
 0x183   : > { %v802_v38 = vpop.f32.mrf.mxu0  ;;  %v2205_v39 = vcombine.low %v2630_v1, %v3007_v31  ;;  %v2594_v31 = vld [vmem:[%s3193_s3 + $0x1d8] sm:$0xff]  }
 0x184   : > { %v832_v40 = vrot.slane %v830_v34, 7  ;;  %v826_v42 = vpack.c.bf16 %v822_v35, %v822_v35  ;;  %v819_v43 = vadd.f32 %v2125_v20, %v809_v36  ;;  %v2322_v44 = vpack.c.bf16 %v822_v35, %v821_v27  ;;  %v2600_v36 = vld [vmem:[%s3193_s3 + $0x1c8] sm:$0xff]  }
 0x185   : > { %1445 = vmatprep.mubr.bf16.mxu0 %v2205_v39  ;;  %v803_v46 = vpop.f32.mrf.mxu0  ;;  %v865_v13 = vrot.slane %v833_v37, 1  ;;  %v2601_v38 = vld [vmem:[%s3193_s3 + $0x188] sm:$0xff]   ;;  %v2603_v39 = vld [vmem:[%s3193_s3 + $0x1c0] sm:$0xff]  }
 0x186   : > { %v835_v47 = vor.u32 %v833_v37, %v832_v40  ;;  %v837_v48 = vshrl.u32 %v826_v42, 16  ;;  %v823_v49 = vmax.f32 %v819_v43, 0.0  ;;  %1191 = vmatprep.mubr.bf16.mxu1 %v2322_v44  ;;  %v810_v50 = vadd.f32 %v803_v46, %v652_v45  ;;  %v2599_v37 = vld [vmem:[%s3193_s3 + $0x150] sm:$0xff]   ;;  %v2602_v40 = vld [vmem:[%s3193_s3 + $0x148] sm:$0xff]   ;;  %v2604_v43 = vld [vmem:[%s3193_s3 + $0x180] sm:$0xff]  }
 0x187   : > { %v805_v51 = vpop.f32.mrf.mxu0  ;;  %v840_v53 = vshll.u32 %v826_v42, 16  ;;  %v866_v23 = vor.u32 %v865_v13, %v830_v34  ;;  %v2596_v34 = vld [vmem:[%s3193_s3 + $0x158] sm:$0xff]   ;;  %v2605_v45 = vld [vmem:[%s3193_s3 + $0x140] sm:$0xff]  }
 0x188   : > { %v839_v52 = vrot.slane %v837_v48, 7  ;;  %v3013_v54 = vpack.c.bf16 %v823_v49, %v823_v49  ;;  %v861_v55 = vsel %vm2820_vm6, 0, %v835_v47  ;;  %v820_v57 = vadd.f32 %v2125_v20, %v810_v50  ;;  %v2590_v20 = vld [vmem:[%s3193_s3 + $0x168] sm:$0xff]  }
 0x189   : > { %v2204_v58 = vcombine.low %v2630_v1, %v861_v55  ;;  %v2324_v63 = vpack.c.bf16 %v823_v49, %v822_v35  ;;  %v867_v7 = vrot.slane %v840_v53, 1  ;;  %v877_v29 = vsel %vm2760_vm2, %v866_v23, 0  ;;  %v2598_v35 = vld [vmem:[%s3193_s3 + $0x190] sm:$0xff]  }
 0x18a   : > { %v842_v61 = vor.u32 %v840_v53, %v839_v52  ;;  %v844_v62 = vshrl.u32 %v3013_v54, 16  ;;  %v824_v0 = vmax.f32 %v820_v57, 0.0  ;;  %v847_v6 = vshll.u32 %v3013_v54, 16  ;;  %v2607_v53 = vld [vmem:[%s3193_s3 + $0xb0] sm:$0xff]   ;;  %v2610_v57 = vld [vmem:[%s3193_s3 + $0x98] sm:$0xff]  }
 0x18b   : > { %1446 = vmatmul.mubr.bf16.vlgmr.msra.gmra.mxu0 %v2204_v58  ;;  %v868_v18 = vor.u32 %v867_v7, %v837_v48  ;;  %v2206_v54 = vcombine.low %v2630_v1, %v877_v29  ;;  %v2611_v58 = vld [vmem:[%s3193_s3 + $0x90] sm:$0xff]   ;;  %v2620_v7 = vld [vmem:[%s3193_s3 + $0x208] sm:$0xff]  }
 0x18c   : > { %2402 = vmatpush3.bf16.msra.mxu0 %v2583_v56  ;;  %1453 = vmatprep.mubr.bf16.mxu0 %v2324_v63  ;;  %v862_v3 = vsel %vm2820_vm6, 0, %v842_v61  ;;  %v846_v5 = vrot.slane %v844_v62, 7  ;;  %v3033_v8 = vpack.c.bf16 %v824_v0, %v824_v0  ;;  %v2323_v15 = vpack.c.bf16 %v824_v0, %v823_v49  ;;  %v2606_v49 = vld [vmem:[%s3193_s3 + $0xb8] sm:$0xff]   ;;  %v2609_v56 = vld [vmem:[%s3193_s3 + $0xa0] sm:$0xff]   ;;  %v2615_v0 = vld [vmem:[%s3193_s3 + $0x230] sm:$0xff]  }
 0x18d   : > { %2403 = vmatprep.subr.bf16.mxu0 %v2585_v60  ;;  %v2174_v9 = vcombine.low %v861_v55, %v862_v3  ;;  %v3064_v26 = vsel %vm2760_vm2, %v868_v18, 0  ;;  %v869_v44 = vrot.slane %v847_v6, 1  ;;  %v2612_v60 = vld [vmem:[%s3193_s3 + $0x88] sm:$0xff]   ;;  %v2613_v61 = vld [vmem:[%s3193_s3 + $0x80] sm:$0xff]  }
 0x18e   : > { %v849_v12 = vor.u32 %v847_v6, %v846_v5  ;;  %v851_v14 = vshrl.u32 %v3033_v8, 16  ;;  %v2176_v32 = vcombine.low %v877_v29, %v3064_v26  ;;  %v2283_v48 = vcombine.low %v3033_v8, %v2630_v1  ;;  %v2618_v5 = vld [vmem:[%s3193_s3 + $0x218] sm:$0xff]   ;;  %v2619_v6 = vld [vmem:[%s3193_s3 + $0x210] sm:$0xff]  }
 0x18f   : > { %1192 = vmatmul.mubr.bf16.vlgmr.msra.gmra.mxu1 %v2174_v9  ;;  %v870_v47 = vor.u32 %v869_v44, %v844_v62  ;;  %v2614_v62 = vld [vmem:[%s3193_s3 + $0x238] sm:$0xff]  }
 0x190   : > { %2440 = vmatpush3.bf16.msra.mxu1 %v3001_v2  ;;  %2404 = vmatpush3.bf16.msra.mxu0 %v2586_v4  ;;  %v863_v16 = vsel %vm2820_vm6, 0, %v849_v12  ;;  %v853_v21 = vrot.slane %v851_v14, 7  ;;  %v854_v2 = vshll.u32 %v3033_v8, 16  ;;  %v2617_v4 = vld [vmem:[%s3193_s3 + $0x220] sm:$0xff]  }
 0x191   : > { %1199 = vmatprep.mubr.bf16.mxu1 %v2323_v15  ;;  %2441 = vmatprep.subr.bf16.mxu1 %v2587_v10  ;;  %v2207_v19 = vcombine.low %v862_v3, %v863_v16  ;;  %v879_v51 = vsel %vm2760_vm2, %v870_v47, 0  ;;  %v2616_v3 = vld [vmem:[%s3193_s3 + $0x228] sm:$0xff]   ;;  %v2621_v8 = vld [vmem:[%s3193_s3 + $0x200] sm:$0xff]  }
 0x192   : > { %2405 = vmatprep.subr.bf16.mxu0 %v2588_v11  ;;  %v856_v24 = vor.u32 %v854_v2, %v853_v21  ;;  %v871_v42 = vrot.slane %v854_v2, 1 }
 0x193   : > { %1454 = vmatmul.mubr.bf16.gmra.mxu0 %v2207_v19 }
 0x194   : > { %2442 = vmatpush3.bf16.msra.mxu1 %v2587_v10  ;;  %2406 = vmatpush3.bf16.msra.mxu0 %v2589_v17  ;;  %v864_v27 = vsel %vm2820_vm6, 0, %v856_v24  ;;  %v872_v46 = vor.u32 %v871_v42, %v851_v14 }
 0x195   : > { %1742 = vmatprep.mubr.bf16.mxu0 %v2324_v63  ;;  %2443 = vmatprep.subr.bf16.mxu1 %v2590_v20  ;;  %v2177_v28 = vcombine.low %v863_v16, %v864_v27  ;;  %v2282_v55 = vcombine.low %v864_v27, %v2630_v1  ;;  %v2209_v63 = vcombine.low %v3064_v26, %v879_v51 }
 0x196   : > { %2407 = vmatprep.subr.bf16.mxu0 %v2591_v22  ;;  %v880_v50 = vsel %vm2760_vm2, %v872_v46, 0 }
 0x197   : > { %1200 = vmatmul.mubr.bf16.gmra.mxu1 %v2177_v28  ;;  %v2179_v52 = vcombine.low %v879_v51, %v880_v50  ;;  %v2284_v9 = vcombine.low %v880_v50, %v2630_v1 }
 0x198   : > { %2408 = vmatpush3.bf16.msra.mxu0 %v2592_v25  ;;  %2444 = vmatpush3.bf16.msra.mxu1 %v2590_v20 }
 0x199   : > { %2455 = vmatprep.mubr.bf16.mxu1 %v2176_v32  ;;  %2445 = vmatprep.subr.bf16.mxu1 %v2593_v30 }
 0x19a   : > { %2409 = vmatprep.subr.bf16.mxu0 %v2594_v31 }
 0x19c   : > { %2410 = vmatpush3.bf16.msra.mxu0 %v2595_v59  ;;  %2446 = vmatpush3.bf16.msra.mxu1 %v2593_v30 }
 0x19d   : > { %2411 = vmatprep.subr.bf16.mxu0 %v2597_v33  ;;  %2447 = vmatprep.subr.bf16.mxu1 %v2596_v34 }
 0x1a0   : > { %2412 = vmatpush3.bf16.msra.mxu0 %v2598_v35  ;;  %2448 = vmatpush3.bf16.msra.mxu1 %v2596_v34 }
 0x1a1   : > { %2413 = vmatprep.subr.bf16.mxu0 %v2600_v36  ;;  %2449 = vmatprep.subr.bf16.mxu1 %v2599_v37 }
 0x1a4   : > { %2414 = vmatpush3.bf16.msra.mxu0 %v2601_v38  ;;  %2450 = vmatpush3.bf16.msra.mxu1 %v2599_v37 }
 0x1a5   : > { %2415 = vmatprep.subr.bf16.mxu0 %v2603_v39  ;;  %2451 = vmatprep.subr.bf16.mxu1 %v2602_v40 }
 0x1a8   : > { %2416 = vmatpush3.bf16.msra.mxu0 %v2604_v43  ;;  %2452 = vmatpush3.bf16.msra.mxu1 %v2602_v40 }
 0x1a9   : > { %2453 = vmatprep.subr.bf16.mxu1 %v2605_v45 }
 0x1ab   : > { %1743 = vmatmul.mubr.bf16.vlgmr.msra.gmra.mxu0 %v2207_v19 }
 0x1ac   : > { %1750 = vmatprep.mubr.bf16.mxu0 %v2283_v48  ;;  %2454 = vmatpush3.bf16.msra.mxu1 %v2605_v45 }
 0x1ad   : > { %2459 = vmatprep.subr.bf16.mxu1 %v2606_v49 }
 0x1af   : > { %2456 = vmatmul.mubr.bf16.vlgmr.msra.gmra.mxu1 %v2179_v52 }
 0x1b0   : > { %2460 = vmatpush3.bf16.msra.mxu1 %v2606_v49  ;;  %2475 = vmatprep.mubr.bf16.mxu1 %v2206_v54 }
 0x1b1   : > { %2461 = vmatprep.subr.bf16.mxu1 %v2607_v53 }
 0x1b3   : > { %1751 = vmatmul.mubr.bf16.gmra.mxu0 %v2282_v55 }
 0x1b4   : > { %2462 = vmatpush3.bf16.msra.mxu1 %v2607_v53 }
 0x1b5   : > { %2463 = vmatprep.subr.bf16.mxu1 %v2608_v41 }
 0x1b8   : > { %2464 = vmatpush3.bf16.msra.mxu1 %v2608_v41 }
 0x1b9   : > { %2465 = vmatprep.subr.bf16.mxu1 %v2609_v56 }
 0x1bc   : > { %2466 = vmatpush3.bf16.msra.mxu1 %v2609_v56 }
 0x1bd   : > { %2467 = vmatprep.subr.bf16.mxu1 %v2610_v57 }
 0x1c0   : > { %2468 = vmatpush3.bf16.msra.mxu1 %v2610_v57 }
 0x1c1   : > { %2469 = vmatprep.subr.bf16.mxu1 %v2611_v58 }
 0x1c4   : > { %2470 = vmatpush3.bf16.msra.mxu1 %v2611_v58 }
 0x1c5   : > { %2471 = vmatprep.subr.bf16.mxu1 %v2612_v60 }
 0x1c8   : > { %2472 = vmatpush3.bf16.msra.mxu1 %v2612_v60 }
 0x1c9   : > { %2473 = vmatprep.subr.bf16.mxu1 %v2613_v61 }
 0x1cc   : > { %2474 = vmatpush3.bf16.msra.mxu1 %v2613_v61  ;;  %v2632_v61 = vmov 1983009808  }
 0x1cd   : > { %2479 = vmatprep.subr.bf16.mxu1 %v2614_v62 }
 0x1cf   : > { %2476 = vmatmul.mubr.bf16.vlgmr.msra.gmra.mxu1 %v2209_v63 }
 0x1d0   : > { %2480 = vmatpush3.bf16.msra.mxu1 %v2614_v62  ;;  %2495 = vmatprep.mubr.bf16.mxu1 %v2209_v63  ;;  %v1832_v62 = vunpack.c.l.s4 %v2632_v61  ;;  %v1834_v63 = vlaneseq }
 0x1d1   : > { %2481 = vmatprep.subr.bf16.mxu1 %v2615_v0 }
 0x1d4   : > { %2482 = vmatpush3.bf16.msra.mxu1 %v2615_v0 }
 0x1d5   : > { %2483 = vmatprep.subr.bf16.mxu1 %v2616_v3 }
 0x1d8   : > { %2484 = vmatpush3.bf16.msra.mxu1 %v2616_v3 }
 0x1d9   : > { %2485 = vmatprep.subr.bf16.mxu1 %v2617_v4 }
 0x1dc   : > { %2486 = vmatpush3.bf16.msra.mxu1 %v2617_v4 }
 0x1dd   : > { %2487 = vmatprep.subr.bf16.mxu1 %v2618_v5 }
 0x1e0   : > { %2488 = vmatpush3.bf16.msra.mxu1 %v2618_v5 }
 0x1e1   : > { %2489 = vmatprep.subr.bf16.mxu1 %v2619_v6 }
 0x1e4   : > { %2490 = vmatpush3.bf16.msra.mxu1 %v2619_v6 }
 0x1e5   : > { %2491 = vmatprep.subr.bf16.mxu1 %v2620_v7 }
 0x1e8   : > { %2492 = vmatpush3.bf16.msra.mxu1 %v2620_v7  ;;  %v2309_v7 = vld [vmem:[%s3194_s4] ss:$0 sm:$0xff] }
 0x1e9   : > { %2493 = vmatprep.subr.bf16.mxu1 %v2621_v8 }
 0x1ec   : > { %2494 = vmatpush3.bf16.msra.mxu1 %v2621_v8 }
 0x1ef   : > { %2496 = vmatmul.mubr.bf16.vlgmr.msra.gmra.mxu1 %v2284_v9 }
 0x24b   : > { %v2379_v10 = vpop.f32.mrf.mxu0 }
 0x24d   : > { %v2380_v12 = vpop.f32.mrf.mxu0 }
 0x24e   : > { %v2381_v46 = vadd.f32 %v2380_v12, %v2379_v10 }
 0x24f   : > { %v2341_v11 = vpop.f32.mrf.mxu1  ;;  %v2382_v14 = vpop.f32.mrf.mxu0 }
 0x251   : > { %v2342_v13 = vpop.f32.mrf.mxu1  ;;  %v2383_v16 = vpop.f32.mrf.mxu0 }
 0x252   : > { %v2343_v37 = vadd.f32 %v2342_v13, %v2341_v11  ;;  %v2384_v57 = vadd.f32 %v2383_v16, %v2382_v14  ;;  %v1833_v13 = vunpack.c.0.s8 %v1832_v62  ;;  %v1835_v14 = vshrl.u32 %v1834_v63, 7 }
 0x253   : > { %v2344_v15 = vpop.f32.mrf.mxu1  ;;  %v2385_v18 = vpop.f32.mrf.mxu0 }
 0x255   : > { %v2345_v17 = vpop.f32.mrf.mxu1  ;;  %v2386_v20 = vpop.f32.mrf.mxu0 }
 0x256   : > { %v2387_v42 = vadd.f32 %v2386_v20, %v2385_v18  ;;  %v2346_v47 = vadd.f32 %v2345_v17, %v2344_v15 }
 0x257   : > { %v2347_v19 = vpop.f32.mrf.mxu1  ;;  %v2388_v2 = vpop.f32.mrf.mxu0 }
 0x259   : > { %v2348_v21 = vpop.f32.mrf.mxu1  ;;  %v2389_v23 = vpop.f32.mrf.mxu0 }
 0x25a   : > { %v2349_v35 = vadd.f32 %v2348_v21, %v2347_v19  ;;  %v2390_v50 = vadd.f32 %v2389_v23, %v2388_v2 }
 0x25b   : > { %v2350_v22 = vpop.f32.mrf.mxu1 }
 0x25d   : > { %v2351_v24 = vpop.f32.mrf.mxu1 }
 0x25e   : > { %v2352_v39 = vadd.f32 %v2351_v24, %v2350_v22  ;;  %v1836_v24 = vsub.s32 %v1833_v13, %v1835_v14 }
 0x26b   : > { %v2417_v25 = vpop.f32.mrf.mxu0 }
 0x26d   : > { %v2418_v1 = vpop.f32.mrf.mxu0 }
 0x26e   : > { %v2419_v51 = vadd.f32 %v2418_v1, %v2417_v25 }
 0x26f   : > { %v2457_v26 = vpop.f32.mrf.mxu1  ;;  %v2420_v28 = vpop.f32.mrf.mxu0 }
 0x270   : > { %v1251_v38 = vadd.f32 %v2457_v26, %v2349_v35 }
 0x271   : > { %v1242_v27 = vpop.f32.mrf.mxu1  ;;  %v2421_v30 = vpop.f32.mrf.mxu0 }
 0x272   : > { %v1243_v43 = vadd.f32 %v2343_v37, %v1242_v27  ;;  %v1456_v49 = vadd.f32 %v2387_v42, %v1251_v38  ;;  %v2422_v6 = vadd.f32 %v2421_v30, %v2420_v28 }
 0x273   : > { %v2458_v29 = vpop.f32.mrf.mxu1  ;;  %v2423_v59 = vpop.f32.mrf.mxu0 }
 0x274   : > { %v1254_v44 = vadd.f32 %v2458_v29, %v2352_v39  ;;  %v1448_v41 = vadd.f32 %v2381_v46, %v1243_v43 }
 0x275   : > { %v1245_v31 = vpop.f32.mrf.mxu1  ;;  %v2424_v34 = vpop.f32.mrf.mxu0 }
 0x276   : > { %v2425_v48 = vadd.f32 %v2424_v34, %v2423_v59  ;;  %v1246_v54 = vadd.f32 %v2346_v47, %v1245_v31  ;;  %v1459_v58 = vadd.f32 %v2390_v50, %v1254_v44  ;;  %v1914_v34 = vsub.s32 0, %v1835_v14 }
 0x277   : > { %v2426_v40 = vpop.f32.mrf.mxu0 }
 0x278   : > { %v1451_v10 = vadd.f32 %v2384_v57, %v1246_v54 }
 0x279   : > { %v2427_v52 = vpop.f32.mrf.mxu0 }
 0x27a   : > { %v2428_v0 = vadd.f32 %v2427_v52, %v2426_v40 }
 0x28f   : > { %v2477_v32 = vpop.f32.mrf.mxu1 }
 0x290   : > { %v1505_v55 = vadd.f32 %v2477_v32, %v1456_v49 }
 0x291   : > { %v1496_v33 = vpop.f32.mrf.mxu1 }
 0x292   : > { %v1497_v3 = vadd.f32 %v1496_v33, %v1448_v41 }
 0x293   : > { %v2478_v36 = vpop.f32.mrf.mxu1 }
 0x294   : > { %v1508_v9 = vadd.f32 %v2478_v36, %v1459_v58 }
 0x295   : > { %v1499_v45 = vpop.f32.mrf.mxu1 }
 0x296   : > { %v1500_v16 = vadd.f32 %v1499_v45, %v1451_v10 }
 0x2af   : > { %v2497_v53 = vpop.f32.mrf.mxu1 }
 0x2b0   : > { %v1802_v56 = vadd.f32 %v2497_v53, %v2425_v48 }
 0x2b1   : > { %v1793_v60 = vpop.f32.mrf.mxu1 }
 0x2b2   : > { %v1810_v4 = vadd.f32 %v1802_v56, %v1505_v55  ;;  %v1794_v5 = vadd.f32 %v2419_v51, %v1793_v60 }
 0x2b3   : > { %v2498_v8 = vpop.f32.mrf.mxu1 }
 0x2b4   : > { %v1808_v11 = vadd.f32 %v1794_v5, %v1497_v3  ;;  %v1805_v12 = vadd.f32 %v2498_v8, %v2428_v0  ;;  %v1820_v17 = vadd.f32 %v2309_v7, %v1810_v4 }
 0x2b5   : > { %v1796_v15 = vpop.f32.mrf.mxu1 }
 0x2b6   : > { %v1811_v18 = vadd.f32 %v1805_v12, %v1508_v9  ;;  %v1797_v19 = vadd.f32 %v2422_v6, %v1796_v15  ;;  %v1818_v20 = vadd.f32 %v2309_v7, %v1808_v11  ;;  %v1824_v22 = vmax.f32 %v1820_v17, 0.0 }
 0x2b8   : > { %v1821_v21 = vadd.f32 %v2309_v7, %v1811_v18  ;;  %v1809_v2 = vadd.f32 %v1797_v19, %v1500_v16  ;;  %v1822_v26 = vmax.f32 %v1818_v20, 0.0 }
 0x2ba   : > { %v1825_v23 = vmax.f32 %v1821_v21, 0.0  ;;  %v1819_v25 = vadd.f32 %v2309_v7, %v1809_v2 }
 0x2bc   : > { %v1827_v1 = vmax.f32 %v1824_v22, %v1825_v23  ;;  %v1823_v27 = vmax.f32 %v1819_v25, 0.0 }
 0x2be   : > { %v1847_v28 = vcombine.high %v1827_v1, %v1827_v1  ;;  %v1854_v29 = vrot.slane %v1827_v1, %v1836_v24  ;;  %v1826_v30 = vmax.f32 %v1822_v26, %v1823_v27 }
 0x2c0   : > { %v1861_v31 = vrot.slane %v1847_v28, %v1836_v24  ;;  %v1862_v32 = vcombine.high %v1854_v29, %v1854_v29  ;;  %v2314_v59 = vrot.slane %v1854_v29, 9  ;;  %v1830_v33 = vcombine.high %v1826_v30, %v1826_v30 }
 0x2c1   : > { %v1837_v35 = vrot.slane %v1826_v30, %v1836_v24 }
 0x2c2   : > { %v1863_v36 = vcombine.high %v1861_v31, %v1861_v31  ;;  %v2315_v37 = vrot.slane %v1862_v32, 9  ;;  %v2316_v38 = vrot.slane %v1861_v31, 9  ;;  %v1900_v39 = vmax.f32 %v1854_v29, %v2314_v59 }
 0x2c3   : > { %v1844_v40 = vrot.slane %v1830_v33, %v1836_v24  ;;  %v1845_v42 = vcombine.high %v1837_v35, %v1837_v35  ;;  %v2310_v43 = vrot.slane %v1837_v35, 9 }
 0x2c4   : > { %v2317_v44 = vrot.slane %v1863_v36, 9  ;;  %v1901_v45 = vmax.f32 %v1862_v32, %v2315_v37  ;;  %v1902_v46 = vmax.f32 %v1861_v31, %v2316_v38  ;;  %v1931_v52 = vrot.slane %v1900_v39, %v1914_v34 }
 0x2c5   : > { %v1846_v47 = vcombine.high %v1844_v40, %v1844_v40  ;;  %v2311_v48 = vrot.slane %v1845_v42, 9  ;;  %v2312_v49 = vrot.slane %v1844_v40, 9  ;;  %v1896_v50 = vmax.f32 %v1837_v35, %v2310_v43 }
 0x2c6   : > { %v1903_v51 = vmax.f32 %v1863_v36, %v2317_v44  ;;  %v1935_v53 = vrot.slane %v1901_v45, %v1914_v34  ;;  %v1939_v54 = vrot.slane %v1902_v46, %v1914_v34 }
 0x2c7   : > { %v2313_v55 = vrot.slane %v1846_v47, 9  ;;  %v1897_v41 = vmax.f32 %v1845_v42, %v2311_v48  ;;  %v1898_v56 = vmax.f32 %v1844_v40, %v2312_v49  ;;  %v1915_v60 = vrot.slane %v1896_v50, %v1914_v34 }
 0x2c8   : > { %v1943_v57 = vrot.slane %v1903_v51, %v1914_v34  ;;  %v1950_v58 = vsel %vm1944_vm7, %v1935_v53, %v1931_v52 }
 0x2c9   : > { %v1951_v61 = vsel %vm1946_vm8, %v1939_v54, %v1950_v58  ;;  %v1899_v62 = vmax.f32 %v1846_v47, %v2313_v55  ;;  %v1919_v63 = vrot.slane %v1897_v41, %v1914_v34  ;;  %v1923_v0 = vrot.slane %v1898_v56, %v1914_v34 }
 0x2ca   : > { %v1952_v3 = vsel %vm1948_vm9, %v1943_v57, %v1951_v61 }
 0x2cb   : > { %1956 = vst [vmem:[%s224_s16 + $0x4] sm:$0xf] %v1952_v3  ;;  %v1927_v4 = vrot.slane %v1899_v62, %v1914_v34  ;;  %v1945_v5 = vsel %vm1944_vm7, %v1919_v63, %v1915_v60 }
 0x2cc   : > { %v1947_v6 = vsel %vm1946_vm8, %v1923_v0, %v1945_v5 }
 0x2cd   : > { %v1949_v7 = vsel %vm1948_vm9, %v1927_v4, %v1947_v6 }
 0x2ce   : > { %1955 = vst [vmem:[%s224_s16] sm:$0xf] %v1949_v7 }
 0x2cf PF: > { %s15_s18 = sadd.s32 1, %s2628_s18  }
 0x2d0   : > { %p12_p4 = scmp.ge.s32.totalorder %s15_s18, 4  }
 0x2d2   :  { %14 = sbr.rel (!%p12_p4) target bundleno = 1 (0x1), region = 74 }

</bundles_post_ra>
